<compile_context>
chip_gen: v5e
topology: v5e:2x2
jax: 0.10.0
libtpu: 0.0.40
codegen_flags: <defaults>
</compile_context>

<pallas_src>
import numpy as np
import jax
import jax.numpy as jnp
from jax import lax
from jax.experimental import pallas as pl
from jax.experimental.pallas import tpu as pltpu


_CPAD = 8   # coordconv input channels (IC + 2) padded to a full sublane tile


# ---------------------------------------------------------------------------
# Host-side (trace-time) helpers
# ---------------------------------------------------------------------------
def _round_up(x, m):
    return (x + m - 1) // m * m


def _linear_interp_matrix(out_size, in_size):
    """align_corners=True linear interpolation matrix of shape (out_size, in_size)."""
    m = np.zeros((out_size, in_size), np.float32)
    for i in range(out_size):
        pos = 0.0 if out_size == 1 else i * (in_size - 1) / (out_size - 1)
        lo = min(int(np.floor(pos)), in_size - 1)
        frac = pos - lo
        m[i, lo] += 1.0 - frac
        if frac > 0.0 and lo + 1 < in_size:
            m[i, lo + 1] += frac
    return m


def _build_constants(B, IC, H, W, C4, K):
    """All shape-dependent constants, built with numpy at trace time."""
    pad = K // 2
    Hp, Wp = H + 2 * pad, W + 2 * pad
    Sp = Hp * Wp                                 # padded pixels per image
    NPS = B * Sp                                 # real padded columns
    NPC = _round_up(NPS, 128)                    # lane-padded patch column count
    halo = pad * Wp + pad                        # max |tap shift| in padded columns
    NP = _round_up(NPC + 2 * halo, 128)          # width of the haloed input slab
    H2, W2 = H // 2, W // 2
    HW2 = H2 * W2
    OC = 4 * C4
    S = H * W

    # coordconv uv grid in the padded layout (physical zeros on the border,
    # matching torch's zero-padding of the concatenated uv channels).
    u = -1.0 + 2.0 * np.arange(W, dtype=np.float32) / max(W - 1, 1)
    v = 1.0 - 2.0 * np.arange(H, dtype=np.float32) / max(H - 1, 1)
    uvp = np.zeros((2, Hp, Wp), np.float32)
    uvp[0, pad:pad + H, pad:pad + W] = np.broadcast_to(u[None, :], (H, W))
    uvp[1, pad:pad + H, pad:pad + W] = np.broadcast_to(v[:, None], (H, W))
    uv_flat = np.tile(uvp.reshape(2, Sp), (1, B))                    # (2, NPS)

    # validity mask over padded columns (used only for the BatchNorm sums)
    mp = np.zeros((Hp, Wp), np.float32)
    mp[pad:pad + H, pad:pad + W] = 1.0
    mask = np.zeros((1, NPC), np.float32)
    mask[0, :NPS] = np.tile(mp.reshape(-1), B)

    # ReverseShuffle gather as a one-hot (NPC, 4*B*HW2) matrix; group order a,b,c,d
    # with parities (row, col): a=(1,0) b=(0,0) c=(0,1) d=(1,1).
    sel = np.zeros((NPC, 4 * B * HW2), np.float32)
    for p, (rp, cp) in enumerate(((1, 0), (0, 0), (0, 1), (1, 1))):
        for b in range(B):
            for h2 in range(H2):
                for w2 in range(W2):
                    src = b * Sp + (2 * h2 + rp + pad) * Wp + (2 * w2 + cp + pad)
                    col = p * (B * HW2) + b * HW2 + h2 * W2 + w2
                    sel[src, col] = 1.0

    # trilinear (align_corners) interpolation constants
    mh = _linear_interp_matrix(H2, H)
    mw = _linear_interp_matrix(W2, W)
    tsp = np.kron(mh.T, mw.T).astype(np.float32)                     # (S, HW2)
    tblk = np.zeros((B * S, B * HW2), np.float32)                    # block-diag over b
    for b in range(B):
        tblk[b * S:(b + 1) * S, b * HW2:(b + 1) * HW2] = tsp
    md = _linear_interp_matrix(OC, IC)                               # (OC, IC)

    dims = dict(pad=pad, Wp=Wp, NPS=NPS, NPC=NPC, halo=halo, NP=NP,
                HW2=HW2, OC=OC, S=S)
    return uv_flat, mask, sel, tblk, md, dims


# ---------------------------------------------------------------------------
# Fused DownRes kernel
# ---------------------------------------------------------------------------
def _make_downres_kernel(B, H, W, C4, K, dims):
    pad, Wp, halo = dims["pad"], dims["Wp"], dims["halo"]
    NP, NPC, HW2 = dims["NP"], dims["NPC"], dims["HW2"]
    M = B * HW2                         # output lane width (= B*H2*W2)
    inv_n = 1.0 / float(B * H * W)      # BatchNorm training-statistics normalizer
    eps = 1e-5
    neg_slope = 0.01                    # nn.LeakyReLU default

    def kernel(xp_ref, w_ref, prm_ref, msk_ref, sel_ref, xcm_ref, md_ref, tbl_ref,
               o_ref, patch_scr):
        # ---- Stage 1: im2col.  Taps come from the register-resident padded input
        #      via XLU rolls + aligned slices; SAME padding is physical zeros, so no
        #      per-tap validity selects and every patch write is a full (8, NPC) tile.
        xp = xp_ref[...]                                        # (8, NP)
        for kh in range(K):
            for kw in range(K):
                d = halo + (kh - pad) * Wp + (kw - pad)         # 0 .. 2*halo
                tap = xp if d == 0 else pltpu.roll(xp, NP - d, axis=1)
                t = kh * K + kw
                patch_scr[pl.ds(t * _CPAD, _CPAD), :] = tap[:, 0:NPC]

        # ---- Stage 2: conv = ONE MXU matmul, then bias + LeakyReLU + BatchNorm
        #      (training stats, fused single-pass sums; pad columns masked out).
        prm = prm_ref[...]                                      # (C4, 3) bias|gamma|beta
        yc = jnp.dot(w_ref[...], patch_scr[...],
                     preferred_element_type=jnp.float32)        # (C4, NPC)
        yc = yc + prm[:, 0:1]
        yc = jnp.where(yc >= 0.0, yc, neg_slope * yc)           # LeakyReLU
        ycm = yc * msk_ref[...]                                 # zero pad columns
        s1 = jnp.sum(ycm, axis=1, keepdims=True)
        s2 = jnp.sum(ycm * ycm, axis=1, keepdims=True)
        mean = s1 * inv_n
        var = s2 * inv_n - mean * mean
        yn = (yc - mean) * (prm[:, 1:2] * lax.rsqrt(var + eps)) + prm[:, 2:3]

        # ---- Stage 3: ReverseShuffle = ONE gather matmul against the host one-hot
        #      (columns ordered p*B*HW2 + b*HW2 + h2*W2 + w2).
        shuf = jnp.dot(yn, sel_ref[...],
                       preferred_element_type=jnp.float32)      # (C4, 4*B*HW2)

        # ---- Stage 4: trilinear (align_corners) residual, all batches at once:
        #      channel interp then block-diagonal spatial interp (2 matmuls total).
        ux = jnp.dot(md_ref[...], xcm_ref[...],
                     preferred_element_type=jnp.float32)        # (OC, B*S)
        up = jnp.dot(ux, tbl_ref[...],
                     preferred_element_type=jnp.float32)        # (OC, B*HW2)

        # ---- Stage 5: assemble the full (OC, B*HW2) = (8,128) tile in registers and
        #      issue ONE unmasked lane-dense store.
        shuf8 = jnp.concatenate([shuf[:, p * M:(p + 1) * M] for p in range(4)],
                                axis=0)                         # (OC, M)
        o_ref[...] = shuf8 + 0.2 * up

    return kernel


# ---------------------------------------------------------------------------
# Wrapper
# ---------------------------------------------------------------------------
def down_res(x, w, bias, gamma, beta):
    """DownRes forward (BatchNorm evaluated with batch statistics)."""
    B, IC, H, W = x.shape
    C4, CIN, K, K2 = w.shape              # CIN = IC + 2 (coordconv), C4 = oc // 4
    assert K == K2 and K % 2 == 1 and CIN == IC + 2 and CIN <= _CPAD
    assert H % 2 == 0 and W % 2 == 0

    uv_flat, mask, sel, tblk, md, dims = _build_constants(B, IC, H, W, C4, K)
    pad, NPS, NPC, NP, halo = dims["pad"], dims["NPS"], dims["NPC"], dims["NP"], dims["halo"]
    HW2, OC, S = dims["HW2"], dims["OC"], dims["S"]

    x = x.astype(jnp.float32)

    # Padded, coordconv'd, channel-padded input slab (8, NP) -- pure layout glue.
    xpad = jnp.pad(x, ((0, 0), (0, 0), (pad, pad), (pad, pad)))
    x_flat = xpad.transpose(1, 0, 2, 3).reshape(IC, NPS)
    slab = jnp.concatenate(
        [jnp.asarray(uv_flat), x_flat,
         jnp.zeros((_CPAD - 2 - IC, NPS), jnp.float32)], axis=0)          # (8, NPS)
    xp = jnp.pad(slab, ((0, 0), (halo, NP - halo - NPS)))                 # (8, NP)

    # Conv weights flattened to (C4, K*K*8), tap-major / channel-minor, zero-padded.
    w8 = jnp.concatenate(
        [w.astype(jnp.float32), jnp.zeros((C4, _CPAD - CIN, K, K), jnp.float32)],
        axis=1)
    wflat = w8.transpose(0, 2, 3, 1).reshape(C4, K * K * _CPAD)

    params = jnp.stack([bias, gamma, beta], axis=1).astype(jnp.float32)   # (C4, 3)
    xcm = x.reshape(B, IC, S).transpose(1, 0, 2).reshape(IC, B * S)       # (IC, B*S)

    # TODO(synk): on v5e/v6e cast the MXU operands (patch, sel, tblk, md, xcm) to bf16
    # (keeping BN statistics / accumulation in f32) once the tolerance budget allows.
    # TODO(synk): for large H*W*B add a conv-channel-tiled grid with
    # dimension_semantics=("parallel",) so both v7x TensorCores engage and the working
    # set stays under v7x's 64 MiB VMEM; at these sizes single-shot is fastest.

    vmem_bytes = 4 * (xp.size + wflat.size + params.size + mask.size + sel.size
                      + xcm.size + md.size + tblk.size
                      + OC * B * HW2 + K * K * _CPAD * NPC)
    vspec = pl.BlockSpec(memory_space=pltpu.MemorySpace.VMEM)
    out_flat = pl.pallas_call(
        _make_downres_kernel(B, H, W, C4, K, dims),
        out_shape=jax.ShapeDtypeStruct((OC, B * HW2), jnp.float32),
        in_specs=[vspec] * 8,
        out_specs=vspec,
        scratch_shapes=[pltpu.VMEM((K * K * _CPAD, NPC), jnp.float32)],   # im2col patches
        compiler_params=pltpu.CompilerParams(
            vmem_limit_bytes=int(2 * vmem_bytes + (4 << 20))),
    )(xp, wflat, params, jnp.asarray(mask), jnp.asarray(sel),
      xcm, jnp.asarray(md), jnp.asarray(tblk))

    # Kernel emits a lane-dense (OC, B*H2*W2) tile; unpermute with one cheap XLA op.
    return out_flat.reshape(OC, B, H // 2, W // 2).transpose(1, 0, 2, 3)


# ---------------------------------------------------------------------------
# Pure-JAX reference (same semantics) for a sanity check
# ---------------------------------------------------------------------------
def coordconv_channels(H, W):
    u = -1.0 + 2.0 * jnp.arange(W, dtype=jnp.float32) / max(W - 1, 1)
    v = 1.0 - 2.0 * jnp.arange(H, dtype=jnp.float32) / max(H - 1, 1)
    uu = jnp.broadcast_to(u[None, :], (H, W))
    vv = jnp.broadcast_to(v[:, None], (H, W))
    return jnp.stack([uu, vv], axis=0)


def reference_downres(x, w, bias, gamma, beta):
    B, IC, H, W = x.shape
    C4 = w.shape[0]
    OC = 4 * C4
    grid2 = coordconv_channels(H, W)
    xcc = jnp.concatenate([jnp.broadcast_to(grid2[None], (B, 2, H, W)), x], axis=1)
    y = lax.conv_general_dilated(
        xcc, w, window_strides=(1, 1), padding="SAME",
        dimension_numbers=("NCHW", "OIHW", "NCHW"))
    y = y + bias[None, :, None, None]
    y = jnp.where(y >= 0, y, 0.01 * y)
    mean = jnp.mean(y, axis=(0, 2, 3), keepdims=True)
    var = jnp.mean((y - mean) ** 2, axis=(0, 2, 3), keepdims=True)
    yn = (y - mean) / jnp.sqrt(var + 1e-5) * gamma[None, :, None, None] \
        + beta[None, :, None, None]
    shuf = jnp.concatenate([yn[:, :, 1::2, 0::2], yn[:, :, 0::2, 0::2],
                            yn[:, :, 0::2, 1::2], yn[:, :, 1::2, 1::2]], axis=1)
    md = jnp.asarray(_linear_interp_matrix(OC, IC))
    mh = jnp.asarray(_linear_interp_matrix(H // 2, H))
    mw = jnp.asarray(_linear_interp_matrix(W // 2, W))
    up = jnp.einsum("oc,ih,jw,bchw->boij", md, mh, mw, x)
    return shuf + 0.2 * up


# ---------------------------------------------------------------------------
if __name__ == "__main__":
    key = jax.random.PRNGKey(0)
    B, IC, H, W = 2, 4, 16, 16          # x: [batch, in_channels, H, W]
    OC = 8                              # DownRes oc (divisible by 4)
    C4, CIN, K = OC // 4, IC + 2, 3

    k1, k2, k3, k4, k5 = jax.random.split(key, 5)
    x = jax.random.normal(k1, (B, IC, H, W), jnp.float32)
    w = 0.1 * jax.random.normal(k2, (C4, CIN, K, K), jnp.float32)   # Conv2d (OIHW)
    bias = 0.1 * jax.random.normal(k3, (C4,), jnp.float32)
    gamma = 1.0 + 0.1 * jax.random.normal(k4, (C4,), jnp.float32)   # BatchNorm weight
    beta = 0.1 * jax.random.normal(k5, (C4,), jnp.float32)          # BatchNorm bias

    out = jax.jit(down_res)(x, w, bias, gamma, beta)
    out = jax.block_until_ready(out)

    ref = reference_downres(x, w, bias, gamma, beta)
    assert out.shape == (B, OC, H // 2, W // 2), out.shape
    max_err = float(jnp.max(jnp.abs(out - ref)))
    assert max_err < 2e-3, f"max abs error {max_err}"

    print("KERNEL_OK")
</pallas_src>

<mosaic_0001>
module attributes {stable_mosaic.version = 11 : i64} {
  func.func @kernel(%arg0: memref<8x896xf32, #tpu.memory_space<vmem>>, %arg1: memref<2x72xf32, #tpu.memory_space<vmem>>, %arg2: memref<2x3xf32, #tpu.memory_space<vmem>>, %arg3: memref<1x768xf32, #tpu.memory_space<vmem>>, %arg4: memref<768x512xf32, #tpu.memory_space<vmem>>, %arg5: memref<4x512xf32, #tpu.memory_space<vmem>>, %arg6: memref<8x4xf32, #tpu.memory_space<vmem>>, %arg7: memref<512x128xf32, #tpu.memory_space<vmem>>, %arg8: memref<8x128xf32, #tpu.memory_space<vmem>>, %arg9: memref<72x768xf32, #tpu.memory_space<vmem>>) attributes {dimension_semantics = [], scalar_prefetch = 0 : i64, scratch_operands = 1 : i64, tpu.core_type = #tpu.core_type<tc>} {
    %c0 = arith.constant 0 : index
    %c0_0 = arith.constant 0 : index
    %0 = vector.load %arg0[%c0, %c0_0] : memref<8x896xf32, #tpu.memory_space<vmem>>, vector<8x896xf32>
    %1 = vector.extract_strided_slice %0 {offsets = [0, 0], sizes = [8, 768], strides = [1, 1]} : vector<8x896xf32> to vector<8x768xf32>
    %c0_1 = arith.constant 0 : index
    %c0_2 = arith.constant 0 : index
    %2 = vector.load %arg9[%c0_1, %c0_2] : memref<72x768xf32, #tpu.memory_space<vmem>>, vector<8x768xf32>
    tpu.vector_store %arg9[%c0_1, %c0_2], %1 {strides = array<i32>} : memref<72x768xf32, #tpu.memory_space<vmem>>, vector<8x768xf32>,
    %c895_i32 = arith.constant 895 : i32
    %3 = tpu.dynamic_rotate %0 by %c895_i32 dim 1 : vector<8x896xf32>, i32 -> vector<8x896xf32>
    %4 = vector.extract_strided_slice %3 {offsets = [0, 0], sizes = [8, 768], strides = [1, 1]} : vector<8x896xf32> to vector<8x768xf32>
    %c8 = arith.constant 8 : index
    %c0_3 = arith.constant 0 : index
    %5 = vector.load %arg9[%c8, %c0_3] : memref<72x768xf32, #tpu.memory_space<vmem>>, vector<8x768xf32>
    tpu.vector_store %arg9[%c8, %c0_3], %4 {strides = array<i32>} : memref<72x768xf32, #tpu.memory_space<vmem>>, vector<8x768xf32>,
    %c894_i32 = arith.constant 894 : i32
    %6 = tpu.dynamic_rotate %0 by %c894_i32 dim 1 : vector<8x896xf32>, i32 -> vector<8x896xf32>
    %7 = vector.extract_strided_slice %6 {offsets = [0, 0], sizes = [8, 768], strides = [1, 1]} : vector<8x896xf32> to vector<8x768xf32>
    %c16 = arith.constant 16 : index
    %c0_4 = arith.constant 0 : index
    %8 = vector.load %arg9[%c16, %c0_4] : memref<72x768xf32, #tpu.memory_space<vmem>>, vector<8x768xf32>
    tpu.vector_store %arg9[%c16, %c0_4], %7 {strides = array<i32>} : memref<72x768xf32, #tpu.memory_space<vmem>>, vector<8x768xf32>,
    %c878_i32 = arith.constant 878 : i32
    %9 = tpu.dynamic_rotate %0 by %c878_i32 dim 1 : vector<8x896xf32>, i32 -> vector<8x896xf32>
    %10 = vector.extract_strided_slice %9 {offsets = [0, 0], sizes = [8, 768], strides = [1, 1]} : vector<8x896xf32> to vector<8x768xf32>
    %c24 = arith.constant 24 : index
    %c0_5 = arith.constant 0 : index
    %11 = vector.load %arg9[%c24, %c0_5] : memref<72x768xf32, #tpu.memory_space<vmem>>, vector<8x768xf32>
    tpu.vector_store %arg9[%c24, %c0_5], %10 {strides = array<i32>} : memref<72x768xf32, #tpu.memory_space<vmem>>, vector<8x768xf32>,
    %c877_i32 = arith.constant 877 : i32
    %12 = tpu.dynamic_rotate %0 by %c877_i32 dim 1 : vector<8x896xf32>, i32 -> vector<8x896xf32>
    %13 = vector.extract_strided_slice %12 {offsets = [0, 0], sizes = [8, 768], strides = [1, 1]} : vector<8x896xf32> to vector<8x768xf32>
    %c32 = arith.constant 32 : index
    %c0_6 = arith.constant 0 : index
    %14 = vector.load %arg9[%c32, %c0_6] : memref<72x768xf32, #tpu.memory_space<vmem>>, vector<8x768xf32>
    tpu.vector_store %arg9[%c32, %c0_6], %13 {strides = array<i32>} : memref<72x768xf32, #tpu.memory_space<vmem>>, vector<8x768xf32>,
    %c876_i32 = arith.constant 876 : i32
    %15 = tpu.dynamic_rotate %0 by %c876_i32 dim 1 : vector<8x896xf32>, i32 -> vector<8x896xf32>
    %16 = vector.extract_strided_slice %15 {offsets = [0, 0], sizes = [8, 768], strides = [1, 1]} : vector<8x896xf32> to vector<8x768xf32>
    %c40 = arith.constant 40 : index
    %c0_7 = arith.constant 0 : index
    %17 = vector.load %arg9[%c40, %c0_7] : memref<72x768xf32, #tpu.memory_space<vmem>>, vector<8x768xf32>
    tpu.vector_store %arg9[%c40, %c0_7], %16 {strides = array<i32>} : memref<72x768xf32, #tpu.memory_space<vmem>>, vector<8x768xf32>,
    %c860_i32 = arith.constant 860 : i32
    %18 = tpu.dynamic_rotate %0 by %c860_i32 dim 1 : vector<8x896xf32>, i32 -> vector<8x896xf32>
    %19 = vector.extract_strided_slice %18 {offsets = [0, 0], sizes = [8, 768], strides = [1, 1]} : vector<8x896xf32> to vector<8x768xf32>
    %c48 = arith.constant 48 : index
    %c0_8 = arith.constant 0 : index
    %20 = vector.load %arg9[%c48, %c0_8] : memref<72x768xf32, #tpu.memory_space<vmem>>, vector<8x768xf32>
    tpu.vector_store %arg9[%c48, %c0_8], %19 {strides = array<i32>} : memref<72x768xf32, #tpu.memory_space<vmem>>, vector<8x768xf32>,
    %c859_i32 = arith.constant 859 : i32
    %21 = tpu.dynamic_rotate %0 by %c859_i32 dim 1 : vector<8x896xf32>, i32 -> vector<8x896xf32>
    %22 = vector.extract_strided_slice %21 {offsets = [0, 0], sizes = [8, 768], strides = [1, 1]} : vector<8x896xf32> to vector<8x768xf32>
    %c56 = arith.constant 56 : index
    %c0_9 = arith.constant 0 : index
    %23 = vector.load %arg9[%c56, %c0_9] : memref<72x768xf32, #tpu.memory_space<vmem>>, vector<8x768xf32>
    tpu.vector_store %arg9[%c56, %c0_9], %22 {strides = array<i32>} : memref<72x768xf32, #tpu.memory_space<vmem>>, vector<8x768xf32>,
    %c858_i32 = arith.constant 858 : i32
    %24 = tpu.dynamic_rotate %0 by %c858_i32 dim 1 : vector<8x896xf32>, i32 -> vector<8x896xf32>
    %25 = vector.extract_strided_slice %24 {offsets = [0, 0], sizes = [8, 768], strides = [1, 1]} : vector<8x896xf32> to vector<8x768xf32>
    %c64 = arith.constant 64 : index
    %c0_10 = arith.constant 0 : index
    %26 = vector.load %arg9[%c64, %c0_10] : memref<72x768xf32, #tpu.memory_space<vmem>>, vector<8x768xf32>
    tpu.vector_store %arg9[%c64, %c0_10], %25 {strides = array<i32>} : memref<72x768xf32, #tpu.memory_space<vmem>>, vector<8x768xf32>,
    %c0_11 = arith.constant 0 : index
    %c0_12 = arith.constant 0 : index
    %27 = vector.load %arg2[%c0_11, %c0_12] : memref<2x3xf32, #tpu.memory_space<vmem>>, vector<2x3xf32>
    %c0_13 = arith.constant 0 : index
    %c0_14 = arith.constant 0 : index
    %28 = vector.load %arg1[%c0_13, %c0_14] : memref<2x72xf32, #tpu.memory_space<vmem>>, vector<2x72xf32>
    %c0_15 = arith.constant 0 : index
    %c0_16 = arith.constant 0 : index
    %29 = vector.load %arg9[%c0_15, %c0_16] : memref<72x768xf32, #tpu.memory_space<vmem>>, vector<72x768xf32>
    %cst = arith.constant dense<0.000000e+00> : vector<2x768xf32>
    %30 = tpu.matmul %28, %29, %cst {dimension_numbers = #tpu.dot_dimension_numbers<[1], [0], [0], [1], [0, 0, 1, 1], [], []>} : vector<2x72xf32>, vector<72x768xf32>, vector<2x768xf32> -> vector<2x768xf32>
    %31 = vector.extract_strided_slice %27 {offsets = [0, 0], sizes = [2, 1], strides = [1, 1]} : vector<2x3xf32> to vector<2x1xf32>
    %32 = vector.broadcast %31 : vector<2x1xf32> to vector<2x768xf32>
    %33 = arith.addf %30, %32 : vector<2x768xf32>
    %cst_17 = arith.constant 0.000000e+00 : f32
    %34 = vector.broadcast %cst_17 : f32 to vector<2x768xf32>
    %35 = arith.cmpf oge, %33, %34 : vector<2x768xf32>
    %cst_18 = arith.constant 0.00999999977 : f32
    %36 = vector.broadcast %cst_18 : f32 to vector<2x768xf32>
    %37 = arith.mulf %36, %33 : vector<2x768xf32>
    %38 = arith.select %35, %33, %37 : vector<2x768xi1>, vector<2x768xf32>
    %c0_19 = arith.constant 0 : index
    %c0_20 = arith.constant 0 : index
    %39 = vector.load %arg3[%c0_19, %c0_20] : memref<1x768xf32, #tpu.memory_space<vmem>>, vector<1x768xf32>
    %40 = vector.broadcast %39 : vector<1x768xf32> to vector<2x768xf32>
    %41 = arith.mulf %38, %40 : vector<2x768xf32>
    %cst_21 = arith.constant dense<0.000000e+00> : vector<2xf32>
    %42 = vector.multi_reduction <add>, %41, %cst_21 [1] : vector<2x768xf32> to vector<2xf32>
    %43 = vector.shape_cast %42 : vector<2xf32> to vector<2x1xf32>
    %44 = arith.mulf %41, %41 : vector<2x768xf32>
    %cst_22 = arith.constant dense<0.000000e+00> : vector<2xf32>
    %45 = vector.multi_reduction <add>, %44, %cst_22 [1] : vector<2x768xf32> to vector<2xf32>
    %46 = vector.shape_cast %45 : vector<2xf32> to vector<2x1xf32>
    %cst_23 = arith.constant 0.001953125 : f32
    %47 = vector.broadcast %cst_23 : f32 to vector<2x1xf32>
    %48 = arith.mulf %43, %47 : vector<2x1xf32>
    %cst_24 = arith.constant 0.001953125 : f32
    %49 = vector.broadcast %cst_24 : f32 to vector<2x1xf32>
    %50 = arith.mulf %46, %49 : vector<2x1xf32>
    %51 = arith.mulf %48, %48 : vector<2x1xf32>
    %52 = arith.subf %50, %51 : vector<2x1xf32>
    %53 = vector.broadcast %48 : vector<2x1xf32> to vector<2x768xf32>
    %54 = arith.subf %38, %53 : vector<2x768xf32>
    %55 = vector.extract_strided_slice %27 {offsets = [0, 1], sizes = [2, 1], strides = [1, 1]} : vector<2x3xf32> to vector<2x1xf32>
    %cst_25 = arith.constant 9.99999974E-6 : f32
    %56 = vector.broadcast %cst_25 : f32 to vector<2x1xf32>
    %57 = arith.addf %52, %56 : vector<2x1xf32>
    %58 = math.rsqrt %57 : vector<2x1xf32>
    %59 = arith.mulf %55, %58 : vector<2x1xf32>
    %60 = vector.broadcast %59 : vector<2x1xf32> to vector<2x768xf32>
    %61 = arith.mulf %54, %60 : vector<2x768xf32>
    %62 = vector.extract_strided_slice %27 {offsets = [0, 2], sizes = [2, 1], strides = [1, 1]} : vector<2x3xf32> to vector<2x1xf32>
    %63 = vector.broadcast %62 : vector<2x1xf32> to vector<2x768xf32>
    %64 = arith.addf %61, %63 : vector<2x768xf32>
    %c0_26 = arith.constant 0 : index
    %c0_27 = arith.constant 0 : index
    %65 = vector.load %arg4[%c0_26, %c0_27] : memref<768x512xf32, #tpu.memory_space<vmem>>, vector<768x512xf32>
    %cst_28 = arith.constant dense<0.000000e+00> : vector<2x512xf32>
    %66 = tpu.matmul %64, %65, %cst_28 {dimension_numbers = #tpu.dot_dimension_numbers<[1], [0], [0], [1], [0, 0, 1, 1], [], []>} : vector<2x768xf32>, vector<768x512xf32>, vector<2x512xf32> -> vector<2x512xf32>
    %c0_29 = arith.constant 0 : index
    %c0_30 = arith.constant 0 : index
    %67 = vector.load %arg6[%c0_29, %c0_30] : memref<8x4xf32, #tpu.memory_space<vmem>>, vector<8x4xf32>
    %c0_31 = arith.constant 0 : index
    %c0_32 = arith.constant 0 : index
    %68 = vector.load %arg5[%c0_31, %c0_32] : memref<4x512xf32, #tpu.memory_space<vmem>>, vector<4x512xf32>
    %cst_33 = arith.constant dense<0.000000e+00> : vector<8x512xf32>
    %69 = tpu.matmul %67, %68, %cst_33 {dimension_numbers = #tpu.dot_dimension_numbers<[1], [0], [0], [1], [0, 0, 1, 1], [], []>} : vector<8x4xf32>, vector<4x512xf32>, vector<8x512xf32> -> vector<8x512xf32>
    %c0_34 = arith.constant 0 : index
    %c0_35 = arith.constant 0 : index
    %70 = vector.load %arg7[%c0_34, %c0_35] : memref<512x128xf32, #tpu.memory_space<vmem>>, vector<512x128xf32>
    %cst_36 = arith.constant dense<0.000000e+00> : vector<8x128xf32>
    %71 = tpu.matmul %69, %70, %cst_36 {dimension_numbers = #tpu.dot_dimension_numbers<[1], [0], [0], [1], [0, 0, 1, 1], [], []>} : vector<8x512xf32>, vector<512x128xf32>, vector<8x128xf32> -> vector<8x128xf32>
    %72 = vector.extract_strided_slice %66 {offsets = [0, 0], sizes = [2, 128], strides = [1, 1]} : vector<2x512xf32> to vector<2x128xf32>
    %73 = vector.extract_strided_slice %66 {offsets = [0, 128], sizes = [2, 128], strides = [1, 1]} : vector<2x512xf32> to vector<2x128xf32>
    %74 = vector.extract_strided_slice %66 {offsets = [0, 256], sizes = [2, 128], strides = [1, 1]} : vector<2x512xf32> to vector<2x128xf32>
    %75 = vector.extract_strided_slice %66 {offsets = [0, 384], sizes = [2, 128], strides = [1, 1]} : vector<2x512xf32> to vector<2x128xf32>
    %76 = tpu.concatenate %72, %73, %74, %75 in 0 : vector<2x128xf32>, vector<2x128xf32>, vector<2x128xf32>, vector<2x128xf32> -> vector<8x128xf32>
    %cst_37 = arith.constant 2.000000e-01 : f32
    %77 = vector.broadcast %cst_37 : f32 to vector<8x128xf32>
    %78 = arith.mulf %77, %71 : vector<8x128xf32>
    %79 = arith.addf %76, %78 : vector<8x128xf32>
    %c0_38 = arith.constant 0 : index
    %c0_39 = arith.constant 0 : index
    %80 = vector.load %arg8[%c0_38, %c0_39] : memref<8x128xf32, #tpu.memory_space<vmem>>, vector<8x128xf32>
    tpu.vector_store %arg8[%c0_38, %c0_39], %79 {strides = array<i32>} : memref<8x128xf32, #tpu.memory_space<vmem>>, vector<8x128xf32>,
    return
  }
}

</mosaic_0001>

<bundles_post_ra>
// kernel: down_res.1
= control target key start
LH: loop header
LB: loop body
LE: loop exit
PB: predicated region body
PF: predicated region fallthrough
CT: control target
= control target key end

     0   :  { %13 = vsyncpa [#allocation4], 0  ;;  %s2449_s0 = inlined_call_operand.vmem [shape: f32[8,896], index: 0, kind: input, shape index: {}]   ;;  %s2450_s1 = inlined_call_operand.vmem [shape: f32[2,72], index: 1, kind: input, shape index: {}]   ;;  %s2451_s2 = inlined_call_operand.vmem [shape: f32[2,3], index: 2, kind: input, shape index: {}]   ;;  %s2452_s3 = inlined_call_operand.hbm [shape: f32[1,768], index: 3, kind: input, shape index: {}]   ;;  %s2453_s4 = inlined_call_operand.hbm [shape: f32[768,512], index: 4, kind: input, shape index: {}]   ;;  %s2454_s5 = inlined_call_operand.vmem [shape: f32[4,512], index: 5, kind: input, shape index: {}]   ;;  %s2455_s6 = inlined_call_operand.hbm [shape: f32[8,4], index: 6, kind: input, shape index: {}]   ;;  %s2456_s7 = inlined_call_operand.hbm [shape: f32[512,128], index: 7, kind: input, shape index: {}]   ;;  %s2457_s8 = inlined_call_operand.vmem [shape: f32[8,128], index: 8, kind: output, shape index: {}]  }
   0x1   :  { %14 = vsyncpa [#allocation6], 0  ;;  %s37_s29 = sshll.u32 %s2453_s4, 4  ;;  %s38_s29 = int_to_ptr.hbm [resolvable:$true] %s37_s29 }
   0x2   :  { %15 = vsyncpa [#allocation9], 0  ;;  %s2015_s30 = smov [#allocation5]   ;;  %s27_s12 = sshll.u32 %s2452_s3, 4  ;;  %s28_s12 = int_to_ptr.hbm [resolvable:$true] %s27_s12 }
   0x3   :  { %s39_s9 = sshll.u32 %s2015_s30, 4  ;;  %s2016_s13 = smov 512   ;;  %s40_s9 = int_to_ptr.vmem [resolvable:$true] %s39_s9 }
   0x4   :  { %s2017_s14 = smov 32   ;;  %s2018_s15 = smov [#allocation3]  }
   0x5   :  { %45 = dma.hbm_to_vmem [thread:$0]  %s38_s29, 49152, %s40_s9, [#allocation6], %s2016_s13, %s2016_s13, %s2017_s14  }
   0x6   :  { %s29_s16 = sshll.u32 %s2018_s15, 4  ;;  %s53_s19 = sshll.u32 %s2455_s6, 4  ;;  %s30_s16 = int_to_ptr.vmem [resolvable:$true] %s29_s16  ;;  %s54_s19 = int_to_ptr.hbm [resolvable:$true] %s53_s19 }
   0x7   :  { %32 = dma.hbm_to_vmem [thread:$0]  %s28_s12, 96, %s30_s16, [#allocation4]  }
   0x8   :  { %s63_s21 = sshll.u32 %s2456_s7, 4  ;;  %s2019_s22 = smov [#allocation7]   ;;  %s64_s21 = int_to_ptr.hbm [resolvable:$true] %s63_s21 }
   0x9   :  { %s55_s23 = sshll.u32 %s2019_s22, 4  ;;  %s2020_s3 = smov [#allocation8]   ;;  %s56_s23 = int_to_ptr.vmem [resolvable:$true] %s55_s23 }
   0xa   :  { %58 = dma.hbm_to_vmem [thread:$0]  %s54_s19, 128, %s56_s23, [#allocation6]  }
   0xb   :  { %s65_s24 = sshll.u32 %s2020_s3, 4  ;;  %s2021_s25 = smov 128   ;;  %s66_s24 = int_to_ptr.vmem [resolvable:$true] %s65_s24 }
   0xc   :  { %s2022_s26 = smov 8  }
   0xd   :  { %71 = dma.hbm_to_vmem [thread:$0]  %s64_s21, 8192, %s66_s24, [#allocation9], %s2021_s25, %s2021_s25, %s2022_s26  }
   0xe   :  { %2009 = dma.done.wait [#allocation4], 96  }
   0xf   :  { %2010 = vsyncadd [#allocation4], 4294967200 }
  0x10   :  { %2011 = dma.done.wait [#allocation6], 49280  }
  0x11   :  { %2012 = vsyncadd [#allocation6], 4294918016 }
  0x12   :  { %2013 = dma.done.wait [#allocation9], 8192  }
  0x13   :  { %2014 = vsyncadd [#allocation9], 4294959104  ;;  %v2094_v0 = vld [vmem:[%s2449_s0 + $0x10] sm:$0xff]  ;;  %v2099_v1 = vld [vmem:[%s2449_s0 + $0x18] sm:$0xff]  ;;  %s2023_s11 = smov 92   ;;  %s2024_s12 = smov 90   ;;  %v115_v14 = vlaneseq }
  0x14   :  { %v2104_v2 = vld [vmem:[%s2449_s0] sm:$0xff]  ;;  %v1807_v3 = vpack.i.bf16 %v2099_v1, %v2094_v0  ;;  %v2111_v4 = vld [vmem:[%s2449_s0 + $0x8] sm:$0xff]  ;;  %s2025_s17 = smov 91   ;;  %s2026_s18 = smov 108   ;;  %v94_v9 = vld [vmem:[%s2449_s0 + $0x30] sm:$0xff]  ;;  %vm380_vm8 = vcmask 588800  }
  0x15   :  { %v1797_v5 = vpack.i.bf16 %v2111_v4, %v2104_v2  ;;  %v2121_v6 = vld [vmem:[%s2449_s0 + $0x20] sm:$0xff]  ;;  %v2126_v7 = vld [vmem:[%s2449_s0 + $0x28] sm:$0xff]  ;;  %s2027_s19 = smov 109   ;;  %s2028_s4 = smov 110   ;;  %v2142_v15 = vand.u32 127, %v115_v14  ;;  %vm542_vm12 = vcmask 1041408  }
  0x16   :  { %1808 = vrot.lane.b32.xlu2 %v1807_v3, %s2023_s11  ;;  %1788 = vrot.lane.b32.xlu0 %v1807_v3, %s2024_s12  ;;  %v1802_v8 = vpack.i.bf16 %v2126_v7, %v2121_v6  ;;  %s2029_s20 = smov 126   ;;  %s2030_s23 = smov 127   ;;  %v1902_v10 = vpack.i.bf16 %v94_v9, %v2126_v7 }
  0x17   :  { %1798 = vrot.lane.b32.xlu1 %v1797_v5, %s2024_s12  ;;  %vm306_vm0 = vcmp.lt.s32.totalorder %v2142_v15, 90  ;;  %vm279_vm1 = vcmp.lt.s32.totalorder %v2142_v15, 91  ;;  %vm252_vm2 = vcmp.lt.s32.totalorder %v2142_v15, 92  ;;  %vm225_vm3 = vcmp.lt.s32.totalorder %v2142_v15, 108 }
  0x18   :  { %vm198_vm4 = vcmp.lt.s32.totalorder %v2142_v15, 109  ;;  %vm171_vm5 = vcmp.lt.s32.totalorder %v2142_v15, 110  ;;  %vm144_vm6 = vcmp.lt.s32.totalorder %v2142_v15, 126  ;;  %vm117_vm7 = vcmp.lt.s32.totalorder %v2142_v15, 127 }
  0x1e   :  { %1793 = vrot.lane.b32.xlu0 %v1807_v3, %s2025_s17  ;;  %1813 = vrot.lane.b32.xlu2 %v1797_v5, %s2025_s17 }
  0x1f   :  { %1803 = vrot.lane.b32.xlu1 %v1802_v8, %s2024_s12 }
  0x26   :  { %1818 = vrot.lane.b32.xlu0 %v1802_v8, %s2025_s17  ;;  %1828 = vrot.lane.b32.xlu2 %v1797_v5, %s2023_s11 }
  0x27   :  { %1823 = vrot.lane.b32.xlu1 %v1807_v3, %s2026_s18 }
  0x2e   :  { %1833 = vrot.lane.b32.xlu0 %v1802_v8, %s2023_s11  ;;  %1843 = vrot.lane.b32.xlu2 %v1797_v5, %s2026_s18 }
  0x2f   :  { %1838 = vrot.lane.b32.xlu1 %v1807_v3, %s2027_s19 }
  0x36   :  { %1848 = vrot.lane.b32.xlu0 %v1802_v8, %s2026_s18  ;;  %1858 = vrot.lane.b32.xlu2 %v1797_v5, %s2027_s19 }
  0x37   :  { %1853 = vrot.lane.b32.xlu1 %v1807_v3, %s2028_s4 }
  0x3e   :  { %1863 = vrot.lane.b32.xlu0 %v1802_v8, %s2027_s19  ;;  %1873 = vrot.lane.b32.xlu2 %v1797_v5, %s2028_s4 }
  0x3f   :  { %1868 = vrot.lane.b32.xlu1 %v1807_v3, %s2029_s20 }
  0x46   :  { %1878 = vrot.lane.b32.xlu0 %v1802_v8, %s2028_s4  ;;  %1883 = vrot.lane.b32.xlu2 %v1807_v3, %s2030_s23 }
  0x47   :  { %304 = vrot.lane.b32.xlu1 %v94_v9, %s2024_s12 }
  0x4e   :  { %1888 = vrot.lane.b32.xlu0 %v1797_v5, %s2029_s20  ;;  %277 = vrot.lane.b32.xlu2 %v94_v9, %s2025_s17 }
  0x4f   :  { %1893 = vrot.lane.b32.xlu1 %v1802_v8, %s2029_s20 }
  0x56   :  { %1898 = vrot.lane.b32.xlu0 %v1797_v5, %s2030_s23  ;;  %250 = vrot.lane.b32.xlu2 %v94_v9, %s2023_s11 }
  0x57   :  { %109 = vrot.lane.b32.xlu1 %v2121_v6, %s2030_s23 }
  0x5e   :  { %223 = vrot.lane.b32.xlu0 %v94_v9, %s2026_s18  ;;  %169 = vrot.lane.b32.xlu2 %v94_v9, %s2028_s4 }
  0x5f   :  { %196 = vrot.lane.b32.xlu1 %v94_v9, %s2027_s19 }
  0x66   :  { %1903 = vrot.lane.b32.xlu0 %v1902_v10, %s2030_s23 }
  0x67   :  { %142 = vrot.lane.b32.xlu1 %v94_v9, %s2029_s20 }
  0x70   :  { %v2140_v11 = vpop.permute.xlu2 %1808 }
  0x71   :  { %v1811_v32 = vunpack.i.h.bf16 %v2140_v11  ;;  %v1810_v33 = vunpack.i.l.bf16 %v2140_v11 }
  0x73   :  { %v256_v45 = vsel %vm252_vm2, %v1810_v33, %v1811_v32 }
  0x78   :  { %v1814_v12 = vpop.permute.xlu2 %1813 }
  0x79   :  { %v1815_v16 = vunpack.i.l.bf16 %v1814_v12  ;;  %v1816_v19 = vunpack.i.h.bf16 %v1814_v12 }
  0x7b   :  { %v285_v27 = vsel %vm279_vm1, %v1815_v16, %v1816_v19 }
  0x80   :  { %v1829_v13 = vpop.permute.xlu2 %1828 }
  0x81   :  { %v1830_v23 = vunpack.i.l.bf16 %v1829_v13  ;;  %v1831_v28 = vunpack.i.h.bf16 %v1829_v13 }
  0x83   :  { %v258_v35 = vsel %vm252_vm2, %v1830_v23, %v1831_v28  ;;  %v257_v48 = vsel %vm252_vm2, %v1831_v28, %v1810_v33  ;;  %v2236_v33 = vld [vmem:[%s2450_s1] sm:$0x3] }
  0x88   :  { %v1789_v17 = vpop.permute.xlu0 %1788  ;;  %v2144_v18 = vpop.permute.xlu2 %1843 }
  0x89   :  { %v1791_v20 = vunpack.i.h.bf16 %v1789_v17  ;;  %v1790_v21 = vunpack.i.l.bf16 %v1789_v17  ;;  %v1799_v22 = vpop.permute.xlu1 %1798  ;;  %v1845_v29 = vunpack.i.l.bf16 %v2144_v18  ;;  %v1846_v34 = vunpack.i.h.bf16 %v2144_v18 }
  0x8a   :  { %v1801_v24 = vunpack.i.h.bf16 %v1799_v22  ;;  %v1800_v25 = vunpack.i.l.bf16 %v1799_v22 }
  0x8b   :  { %v310_v26 = vsel %vm306_vm0, %v1790_v21, %v1791_v20  ;;  %v231_v38 = vsel %vm225_vm3, %v1845_v29, %v1846_v34 }
  0x8c   :  { %v311_v30 = vsel %vm306_vm0, %v1801_v24, %v1790_v21  ;;  %431 = vmatpush.msra.mxu2 %v310_v26  ;;  %v312_v31 = vsel %vm306_vm0, %v1800_v25, %v1801_v24 }
  0x8d   :  { %411 = vmatpush.msra.mxu1 %v311_v30  ;;  %391 = vmatpush.msra.mxu0 %v312_v31 }
  0x8f   :  { %392 = vmatpush.msra.mxu0 %v285_v27 }
  0x90   :  { %v1794_v36 = vpop.permute.xlu0 %1793  ;;  %v1859_v37 = vpop.permute.xlu2 %1858 }
  0x91   :  { %v1796_v39 = vunpack.i.h.bf16 %v1794_v36  ;;  %v1795_v40 = vunpack.i.l.bf16 %v1794_v36  ;;  %v1860_v41 = vunpack.i.l.bf16 %v1859_v37  ;;  %v2166_v42 = vpop.permute.xlu1 %1803  ;;  %393 = vmatpush.msra.mxu0 %v258_v35  ;;  %v1861_v43 = vunpack.i.h.bf16 %v1859_v37 }
  0x92   :  { %v1805_v44 = vunpack.i.l.bf16 %v2166_v42 }
  0x93   :  { %v284_v46 = vsel %vm279_vm1, %v1816_v19, %v1795_v40  ;;  %v283_v47 = vsel %vm279_vm1, %v1795_v40, %v1796_v39  ;;  %394 = vmatpush.msra.mxu0 %v231_v38  ;;  %v204_v50 = vsel %vm198_vm4, %v1860_v41, %v1861_v43 }
  0x94   :  { %412 = vmatpush.msra.mxu1 %v284_v46  ;;  %432 = vmatpush.msra.mxu2 %v283_v47  ;;  %v309_v49 = vsel %vm306_vm0, %v1791_v20, %v1805_v44 }
  0x95   :  { %451 = vmatpush.msra.mxu3 %v309_v49  ;;  %395 = vmatpush.msra.mxu0 %v204_v50 }
  0x96   :  { %413 = vmatpush.msra.mxu1 %v257_v48  ;;  %433 = vmatpush.msra.mxu2 %v256_v45 }
  0x98   :  { %v2184_v51 = vpop.permute.xlu0 %1818  ;;  %v1874_v52 = vpop.permute.xlu2 %1873 }
  0x99   :  { %v1820_v53 = vunpack.i.l.bf16 %v2184_v51  ;;  %v1875_v54 = vunpack.i.l.bf16 %v1874_v52  ;;  %v1824_v55 = vpop.permute.xlu1 %1823  ;;  %v1876_v56 = vunpack.i.h.bf16 %v1874_v52 }
  0x9a   :  { %v1826_v57 = vunpack.i.h.bf16 %v1824_v55  ;;  %v1825_v58 = vunpack.i.l.bf16 %v1824_v55 }
  0x9b   :  { %v282_v59 = vsel %vm279_vm1, %v1796_v39, %v1820_v53  ;;  %v177_v62 = vsel %vm171_vm5, %v1875_v54, %v1876_v56  ;;  %v2251_v39 = vld [vmem:[%s2451_s2] sm:$0x3] }
  0x9c   :  { %452 = vmatpush.msra.mxu3 %v282_v59  ;;  %v230_v60 = vsel %vm225_vm3, %v1846_v34, %v1825_v58  ;;  %v229_v61 = vsel %vm225_vm3, %v1825_v58, %v1826_v57  ;;  %396 = vmatpush.msra.mxu0 %v177_v62 }
  0x9d   :  { %414 = vmatpush.msra.mxu1 %v230_v60  ;;  %434 = vmatpush.msra.mxu2 %v229_v61  ;;  %v1821_v60 = vunpack.i.h.bf16 %v2184_v51 }
  0xa0   :  { %v2198_v63 = vpop.permute.xlu0 %1833  ;;  %v1884_v22 = vpop.permute.xlu2 %1883 }
  0xa1   :  { %v1835_v3 = vunpack.i.l.bf16 %v2198_v63  ;;  %v1839_v5 = vpop.permute.xlu1 %1838  ;;  %v1886_v23 = vunpack.i.h.bf16 %v1884_v22  ;;  %v1885_v24 = vunpack.i.l.bf16 %v1884_v22  ;;  %v1836_v62 = vunpack.i.h.bf16 %v2198_v63 }
  0xa2   :  { %v1841_v8 = vunpack.i.h.bf16 %v1839_v5  ;;  %v1840_v9 = vunpack.i.l.bf16 %v1839_v5 }
  0xa3   :  { %v255_v10 = vsel %vm252_vm2, %v1811_v32, %v1835_v3  ;;  %v121_v32 = vsel %vm117_vm7, %v1885_v24, %v1886_v23 }
  0xa4   :  { %453 = vmatpush.msra.mxu3 %v255_v10  ;;  %v203_v11 = vsel %vm198_vm4, %v1861_v43, %v1840_v9  ;;  %v202_v12 = vsel %vm198_vm4, %v1840_v9, %v1841_v8 }
  0xa5   :  { %415 = vmatpush.msra.mxu1 %v203_v11  ;;  %435 = vmatpush.msra.mxu2 %v202_v12 }
  0xa8   :  { %v2209_v13 = vpop.permute.xlu0 %1848  ;;  %v278_v46 = vpop.permute.xlu2 %277 }
  0xa9   :  { %v1850_v14 = vunpack.i.l.bf16 %v2209_v13  ;;  %v1854_v16 = vpop.permute.xlu1 %1853  ;;  %v1851_v9 = vunpack.i.h.bf16 %v2209_v13 }
  0xaa   :  { %v1856_v17 = vunpack.i.h.bf16 %v1854_v16  ;;  %v1855_v18 = vunpack.i.l.bf16 %v1854_v16 }
  0xab   :  { %v228_v19 = vsel %vm225_vm3, %v1826_v57, %v1850_v14  ;;  %v227_v11 = vsel %vm225_vm3, %v1850_v14, %v1851_v9 }
  0xac   :  { %454 = vmatpush.msra.mxu3 %v228_v19  ;;  %v176_v20 = vsel %vm171_vm5, %v1876_v56, %v1855_v18  ;;  %v175_v21 = vsel %vm171_vm5, %v1855_v18, %v1856_v17  ;;  %v1806_v56 = vunpack.i.h.bf16 %v2166_v42 }
  0xad   :  { %416 = vmatpush.msra.mxu1 %v176_v20  ;;  %436 = vmatpush.msra.mxu2 %v175_v21 }
  0xae   :  { %v308_v5 = vsel %vm306_vm0, %v1805_v44, %v1806_v56  ;;  %v254_v44 = vsel %vm252_vm2, %v1835_v3, %v1836_v62 }
  0xb0   :  { %v2220_v25 = vpop.permute.xlu0 %1863  ;;  %v251_v61 = vpop.permute.xlu2 %250 }
  0xb1   :  { %v1865_v26 = vunpack.i.l.bf16 %v2220_v25  ;;  %v1869_v27 = vpop.permute.xlu1 %1868  ;;  %v1866_v42 = vunpack.i.h.bf16 %v2220_v25  ;;  %v253_v51 = vsel %vm252_vm2, %v1836_v62, %v251_v61 }
  0xb2   :  { %v1871_v28 = vunpack.i.h.bf16 %v1869_v27  ;;  %v1870_v29 = vunpack.i.l.bf16 %v1869_v27 }
  0xb3   :  { %v201_v30 = vsel %vm198_vm4, %v1841_v8, %v1865_v26  ;;  %v200_v16 = vsel %vm198_vm4, %v1865_v26, %v1866_v42 }
  0xb4   :  { %455 = vmatpush.msra.mxu3 %v201_v30  ;;  %v148_v31 = vsel %vm144_vm6, %v1870_v29, %v1871_v28 }
  0xb5   :  { %437 = vmatpush.msra.mxu2 %v148_v31 }
  0xb7   :  { %438 = vmatpush.msra.mxu2 %v121_v32 }
  0xb8   :  { %v2238_v34 = vpop.permute.xlu0 %1878  ;;  %v170_v12 = vpop.permute.xlu2 %169 }
  0xb9   :  { %v1880_v35 = vunpack.i.l.bf16 %v2238_v34  ;;  %v305_v36 = vpop.permute.xlu1 %304  ;;  %439 = vmatpush.msra.mxu2 %v2094_v0  ;;  %v2031_v0 = vmov 0  }
  0xba   :  { %1756 = vmatmul.msk.f32.vlgmr.msra.gmra.mxu2 %vm380_vm8, %v2236_v33  ;;  %1907 = vset.pattern.permute.xlu2 %v2031_v0  ;;  %v307_v8 = vsel %vm306_vm0, %v1806_v56, %v305_v36 }
  0xbb   :  { %v174_v37 = vsel %vm171_vm5, %v1856_v17, %v1880_v35  ;;  %377 = vperm.xlu2 %1907, %v2251_v39  }
  0xbc   :  { %456 = vmatpush.msra.mxu3 %v174_v37 }
  0xc0   :  { %v1889_v38 = vpop.permute.xlu0 %1888 }
  0xc1   :  { %v1891_v40 = vunpack.i.h.bf16 %v1889_v38  ;;  %v1890_v41 = vunpack.i.l.bf16 %v1889_v38  ;;  %v2253_v43 = vpop.permute.xlu1 %1893 }
  0xc2   :  { %v1895_v45 = vunpack.i.l.bf16 %v2253_v43  ;;  %v1896_v3 = vunpack.i.h.bf16 %v2253_v43 }
  0xc3   :  { %v150_v47 = vsel %vm144_vm6, %v1890_v41, %v1891_v40  ;;  %v149_v48 = vsel %vm144_vm6, %v1891_v40, %v1870_v29  ;;  %v522_v29 = vld [vmem:[#allocation3] sm:$0x3f] }
  0xc4   :  { %397 = vmatpush.msra.mxu0 %v150_v47  ;;  %417 = vmatpush.msra.mxu1 %v149_v48  ;;  %v147_v49 = vsel %vm144_vm6, %v1871_v28, %v1895_v45  ;;  %v146_v22 = vsel %vm144_vm6, %v1895_v45, %v1896_v3  ;;  %v524_v15 = vperm.slane %v522_v29, 0  ;;  %v526_v38 = vperm.slane %v522_v29, 2 }
  0xc5   :  { %457 = vmatpush.msra.mxu3 %v147_v49 }
  0xc8   :  { %v1899_v50 = vpop.permute.xlu0 %1898 }
  0xc9   :  { %v1901_v52 = vunpack.i.h.bf16 %v1899_v50  ;;  %v1900_v54 = vunpack.i.l.bf16 %v1899_v50  ;;  %v110_v55 = vpop.permute.xlu1 %109  ;;  %v527_v50 = vperm.slane %v522_v29, 3 }
  0xca   :  { %v120_v57 = vsel %vm117_vm7, %v1886_v23, %v110_v55 }
  0xcb   :  { %458 = vmatpush.msra.mxu3 %v120_v57  ;;  %v123_v58 = vsel %vm117_vm7, %v1900_v54, %v1901_v52  ;;  %v122_v59 = vsel %vm117_vm7, %v1901_v52, %v1885_v24 }
  0xcc   :  { %398 = vmatpush.msra.mxu0 %v123_v58  ;;  %418 = vmatpush.msra.mxu1 %v122_v59 }
  0xcd   :  { %459 = vmatpush.msra.mxu3 %v2099_v1  ;;  %v281_v1 = vsel %vm279_vm1, %v1820_v53, %v1821_v60  ;;  %v1881_v53 = vunpack.i.h.bf16 %v2238_v34 }
  0xce   :  { %399 = vmatpush.msra.mxu0 %v2104_v2  ;;  %419 = vmatpush.msra.mxu1 %v2111_v4  ;;  %v280_v2 = vsel %vm279_vm1, %v1821_v60, %v278_v46 }
  0xcf   :  { %1757 = vmatmul.msk.f32.vlgmr.msra.gmra.mxu3 %vm380_vm8, %v2236_v33  ;;  %1754 = vmatmul.msk.f32.vlgmr.msra.gmra.mxu0 %vm380_vm8, %v2236_v33  ;;  %v173_v14 = vsel %vm171_vm5, %v1880_v35, %v1881_v53  ;;  %v172_v18 = vsel %vm171_vm5, %v1881_v53, %v170_v12  ;;  %vm1742_vm5 = vcmask 1045504  }
  0xd0   :  { %471 = vmatpush.msrb.mxu0 %v308_v5  ;;  %491 = vmatpush.msrb.mxu1 %v307_v8  ;;  %v224_v10 = vpop.permute.xlu0 %223 }
  0xd1   :  { %v197_v4 = vpop.permute.xlu1 %196  ;;  %1755 = vmatmul.msk.f32.vlgmr.msra.gmra.mxu1 %vm380_vm8, %v2236_v33  ;;  %v226_v63 = vsel %vm225_vm3, %v1851_v9, %v224_v10  ;;  %v528_v9 = vperm.slane %v522_v29, 4  ;;  %vm1498_vm3 = vcmask 1043456  }
  0xd2   :  { %472 = vmatpush.msrb.mxu0 %v281_v1  ;;  %492 = vmatpush.msrb.mxu1 %v280_v2  ;;  %v199_v17 = vsel %vm198_vm4, %v1866_v42, %v197_v4  ;;  %v529_v4 = vperm.slane %v522_v29, 5  ;;  %vm1494_vm4 = vcmask 31744  }
  0xd4   :  { %473 = vmatpush.msrb.mxu0 %v254_v44  ;;  %493 = vmatpush.msrb.mxu1 %v253_v51 }
  0xd6   :  { %474 = vmatpush.msrb.mxu0 %v227_v11  ;;  %494 = vmatpush.msrb.mxu1 %v226_v63 }
  0xd8   :  { %475 = vmatpush.msrb.mxu0 %v200_v16  ;;  %495 = vmatpush.msrb.mxu1 %v199_v17  ;;  %v1904_v13 = vpop.permute.xlu0 %1903 }
  0xd9   :  { %v1906_v19 = vunpack.i.h.bf16 %v1904_v13  ;;  %v1905_v20 = vunpack.i.l.bf16 %v1904_v13  ;;  %v143_v21 = vpop.permute.xlu1 %142 }
  0xda   :  { %476 = vmatpush.msrb.mxu0 %v173_v14  ;;  %496 = vmatpush.msrb.mxu1 %v172_v18  ;;  %v145_v23 = vsel %vm144_vm6, %v1896_v3, %v143_v21 }
  0xdb   :  { %v119_v24 = vsel %vm117_vm7, %v110_v55, %v1905_v20  ;;  %v118_v25 = vsel %vm117_vm7, %v1905_v20, %v1906_v19 }
  0xdc   :  { %477 = vmatpush.msrb.mxu0 %v146_v22  ;;  %497 = vmatpush.msrb.mxu1 %v145_v23 }
  0xde   :  { %478 = vmatpush.msrb.mxu0 %v119_v24  ;;  %498 = vmatpush.msrb.mxu1 %v118_v25 }
  0xe0   :  { %479 = vmatpush.msrb.mxu0 %v2121_v6  ;;  %499 = vmatpush.msrb.mxu1 %v2126_v7  ;;  %v525_v7 = vperm.slane %v522_v29, 1  ;;  %v2032_v29 = vmov 1  }
  0xe1   :  { %1758 = vmatmul.msk.f32.vlgmr.msrb.gmra.mxu0 %vm380_vm8, %v2236_v33  ;;  %1759 = vmatmul.msk.f32.vlgmr.msrb.gmra.mxu1 %vm380_vm8, %v2236_v33 }
  0xe2   :  { %1908 = vset.pattern.permute.xlu2 %v2032_v29  ;;  %v766_v29 = vld [vmem:[#allocation5 + $0x4a0] sm:$0xff] }
 0x115   :  { %v378_v27 = vpop.permute.xlu2 %377 }
 0x13d   :  { %v441_v26 = vpop.f32.mrf.mxu2 }
 0x13e   :  { %v442_v28 = vadd.f32 %v441_v26, %v378_v27 }
 0x140   :  { %v512_v34 = vmul.f32 0.01, %v442_v28  ;;  %vm506_vm10 = vcmp.ge.f32.partialorder %v442_v28, 0.0 }
 0x142   :  { %v2342_v40 = vsel %vm506_vm10, %v442_v28, %v512_v34 }
 0x143   :  { %v538_v46 = vmul.f32 %v526_v38, %v2342_v40  ;;  %v806_v38 = vld [vmem:[#allocation5 + $0x5e0] sm:$0xff] }
 0x144   :  { %1042 = vmatpush.msra.mxu0 %v806_v38  ;;  %v630_v38 = vld [vmem:[#allocation5 + $0x60] sm:$0xff] }
 0x145   :  { %v558_v56 = vmul.f32 %v538_v46, %v538_v46  ;;  %v546_v61 = vsel %vm542_vm12, %v538_v46, 0.0  ;;  %v802_v46 = vld [vmem:[#allocation5 + $0x5c0] sm:$0xff] }
 0x146   :  { %1043 = vmatpush.msra.mxu0 %v802_v46  ;;  %v690_v46 = vld [vmem:[#allocation5 + $0x240] sm:$0xff] }
 0x147   :  { %v565_v44 = vsel %vm542_vm12, %v558_v56, 0.0  ;;  %v730_v56 = vld [vmem:[#allocation5 + $0x380] sm:$0xff] }
 0x14c   :  { %v401_v30 = vpop.f32.mrf.mxu0 }
 0x14d   :  { %v402_v31 = vadd.f32 %v401_v30, %v378_v27  ;;  %v2033_v30 = vmov 2  }
 0x14e   :  { %v421_v32 = vpop.f32.mrf.mxu1  ;;  %1910 = vset.pattern.permute.xlu0 %v2033_v30 }
 0x14f   :  { %vm504_vm9 = vcmp.ge.f32.partialorder %v402_v31, 0.0  ;;  %v510_v35 = vmul.f32 0.01, %v402_v31  ;;  %v422_v6 = vadd.f32 %v421_v32, %v378_v27 }
 0x151   :  { %v2339_v36 = vsel %vm504_vm9, %v402_v31, %v510_v35  ;;  %vm505_vm11 = vcmp.ge.f32.partialorder %v422_v6, 0.0  ;;  %v511_v37 = vmul.f32 0.01, %v422_v6 }
 0x152   :  { %v536_v33 = vmul.f32 %v524_v15, %v2339_v36  ;;  %v461_v41 = vpop.f32.mrf.mxu3 }
 0x153   :  { %v2344_v43 = vsel %vm505_vm11, %v422_v6, %v511_v37  ;;  %v462_v0 = vadd.f32 %v461_v41, %v378_v27  ;;  %v742_v37 = vld [vmem:[#allocation5 + $0x3e0] sm:$0xff] }
 0x154   :  { %v537_v45 = vmul.f32 %v525_v7, %v2344_v43  ;;  %v556_v48 = vmul.f32 %v536_v33, %v536_v33  ;;  %v543_v52 = vsel %vm542_vm12, %v536_v33, 0.0  ;;  %v678_v7 = vld [vmem:[#allocation5 + $0x1e0] sm:$0xff]  ;;  %1022 = vmatpush.msrb.mxu3 %v742_v37 }
 0x155   :  { %vm507_vm13 = vcmp.ge.f32.partialorder %v462_v0, 0.0  ;;  %v513_v47 = vmul.f32 0.01, %v462_v0  ;;  %1002 = vmatpush.msrb.mxu2 %v678_v7  ;;  %v870_v41 = vld [vmem:[#allocation5 + $0x7e0] sm:$0xff] }
 0x156   :  { %v557_v49 = vmul.f32 %v537_v45, %v537_v45  ;;  %v544_v54 = vsel %vm542_vm12, %v537_v45, 0.0  ;;  %v562_v57 = vsel %vm542_vm12, %v556_v48, 0.0  ;;  %v738_v45 = vld [vmem:[#allocation5 + $0x3c0] sm:$0xff]  ;;  %1062 = vmatpush.msra.mxu1 %v870_v41 }
 0x157   :  { %v2350_v55 = vsel %vm507_vm13, %v462_v0, %v513_v47  ;;  %v545_v58 = vadd.f32 %v544_v54, %v543_v52  ;;  %v674_v0 = vld [vmem:[#allocation5 + $0x1c0] sm:$0xff]  ;;  %1023 = vmatpush.msrb.mxu3 %v738_v45 }
 0x158   :  { %v563_v59 = vsel %vm542_vm12, %v557_v49, 0.0  ;;  %v539_v60 = vmul.f32 %v527_v50, %v2350_v55  ;;  %v866_v47 = vld [vmem:[#allocation5 + $0x7c0] sm:$0xff]  ;;  %1003 = vmatpush.msrb.mxu2 %v674_v0 }
 0x159   :  { %v564_v1 = vadd.f32 %v563_v59, %v562_v57  ;;  %v547_v42 = vadd.f32 %v546_v61, %v545_v58  ;;  %v670_v48 = vld [vmem:[#allocation5 + $0x1a0] sm:$0xff]  ;;  %1063 = vmatpush.msra.mxu1 %v866_v47 }
 0x15a   :  { %v559_v2 = vmul.f32 %v539_v60, %v539_v60  ;;  %v548_v11 = vsel %vm542_vm12, %v539_v60, 0.0  ;;  %v734_v49 = vld [vmem:[#allocation5 + $0x3a0] sm:$0xff]  ;;  %1004 = vmatpush.msrb.mxu2 %v670_v48 }
 0x15b   :  { %v566_v3 = vadd.f32 %v565_v44, %v564_v1  ;;  %v549_v14 = vadd.f32 %v548_v11, %v547_v42  ;;  %v798_v50 = vld [vmem:[#allocation5 + $0x5a0] sm:$0xff]  ;;  %1024 = vmatpush.msrb.mxu3 %v734_v49 }
 0x15c   :  { %v567_v13 = vsel %vm542_vm12, %v559_v2, 0.0  ;;  %v862_v52 = vld [vmem:[#allocation5 + $0x7a0] sm:$0xff]  ;;  %1044 = vmatpush.msra.mxu0 %v798_v50 }
 0x15d   :  { %v568_v22 = vadd.f32 %v567_v13, %v566_v3  ;;  %v666_v54 = vld [vmem:[#allocation5 + $0x180] sm:$0xff]  ;;  %1064 = vmatpush.msra.mxu1 %v862_v52  ;;  %1025 = vmatpush.msrb.mxu3 %v730_v56 }
 0x15e   :  { %v481_v62 = vpop.f32.mrf.mxu0  ;;  %v501_v5 = vpop.f32.mrf.mxu1  ;;  %v794_v57 = vld [vmem:[#allocation5 + $0x580] sm:$0xff]  ;;  %1005 = vmatpush.msrb.mxu2 %v666_v54 }
 0x15f   :  { %v482_v8 = vadd.f32 %v481_v62, %v378_v27  ;;  %v502_v10 = vadd.f32 %v501_v5, %v378_v27  ;;  %v858_v58 = vld [vmem:[#allocation5 + $0x780] sm:$0xff]  ;;  %1045 = vmatpush.msra.mxu0 %v794_v57 }
 0x160   :  { %v662_v59 = vld [vmem:[#allocation5 + $0x160] sm:$0xff]  ;;  %1065 = vmatpush.msra.mxu1 %v858_v58 }
 0x161   :  { %vm508_vm14 = vcmp.ge.f32.partialorder %v482_v8, 0.0  ;;  %v514_v51 = vmul.f32 0.01, %v482_v8  ;;  %vm509_vm15 = vcmp.ge.f32.partialorder %v502_v10, 0.0  ;;  %v515_v53 = vmul.f32 0.01, %v502_v10  ;;  %1006 = vmatpush.msrb.mxu2 %v662_v59 }
 0x162   :  { %v726_v60 = vld [vmem:[#allocation5 + $0x360] sm:$0xff] }
 0x163   :  { %v2358_v63 = vsel %vm508_vm14, %v482_v8, %v514_v51  ;;  %v2360_v12 = vsel %vm509_vm15, %v502_v10, %v515_v53  ;;  %v790_v61 = vld [vmem:[#allocation5 + $0x560] sm:$0xff]  ;;  %1026 = vmatpush.msrb.mxu3 %v726_v60 }
 0x164   :  { %v540_v16 = vmul.f32 %v528_v9, %v2358_v63  ;;  %v541_v17 = vmul.f32 %v529_v4, %v2360_v12  ;;  %v854_v62 = vld [vmem:[#allocation5 + $0x760] sm:$0xff]  ;;  %1046 = vmatpush.msra.mxu0 %v790_v61 }
 0x165   :  { %v658_v5 = vld [vmem:[#allocation5 + $0x140] sm:$0xff]  ;;  %1066 = vmatpush.msra.mxu1 %v854_v62  ;;  %v679_v62 = vld [vmem:[#allocation5 + $0x1e8] sm:$0xff] }
 0x166   :  { %v550_v18 = vsel %vm542_vm12, %v540_v16, 0.0  ;;  %v560_v19 = vmul.f32 %v540_v16, %v540_v16  ;;  %v561_v20 = vmul.f32 %v541_v17, %v541_v17  ;;  %v552_v23 = vsel %vm542_vm12, %v541_v17, 0.0  ;;  %v722_v8 = vld [vmem:[#allocation5 + $0x340] sm:$0xff]  ;;  %1007 = vmatpush.msrb.mxu2 %v658_v5  ;;  %v743_v5 = vld [vmem:[#allocation5 + $0x3e8] sm:$0xff] }
 0x167   :  { %v551_v21 = vadd.f32 %v550_v18, %v549_v14  ;;  %v786_v10 = vld [vmem:[#allocation5 + $0x540] sm:$0xff]  ;;  %1027 = vmatpush.msrb.mxu3 %v722_v8 }
 0x168   :  { %v569_v24 = vsel %vm542_vm12, %v560_v19, 0.0  ;;  %v571_v27 = vsel %vm542_vm12, %v561_v20, 0.0  ;;  %v850_v1 = vld [vmem:[#allocation5 + $0x740] sm:$0xff]  ;;  %1047 = vmatpush.msra.mxu0 %v786_v10  ;;  %v675_v10 = vld [vmem:[#allocation5 + $0x1c8] sm:$0xff] }
 0x169   :  { %v553_v25 = vadd.f32 %v552_v23, %v551_v21  ;;  %v570_v26 = vadd.f32 %v569_v24, %v568_v22  ;;  %v654_v4 = vld [vmem:[#allocation5 + $0x120] sm:$0xff]  ;;  %1067 = vmatpush.msra.mxu1 %v850_v1  ;;  %v739_v1 = vld [vmem:[#allocation5 + $0x3c8] sm:$0xff] }
 0x16a   :  { %v718_v42 = vld [vmem:[#allocation5 + $0x320] sm:$0xff]  ;;  %1008 = vmatpush.msrb.mxu2 %v654_v4  ;;  %v671_v4 = vld [vmem:[#allocation5 + $0x1a8] sm:$0xff] }
 0x16b   :  { %554 = vadd.xlane.f32.xlu0 %v553_v25  ;;  %v572_v28 = vadd.f32 %v571_v27, %v570_v26  ;;  %v782_v44 = vld [vmem:[#allocation5 + $0x520] sm:$0xff]  ;;  %1028 = vmatpush.msrb.mxu3 %v718_v42 }
 0x16c   :  { %v846_v51 = vld [vmem:[#allocation5 + $0x720] sm:$0xff]  ;;  %1048 = vmatpush.msra.mxu0 %v782_v44 }
 0x16d   :  { %573 = vadd.xlane.f32.xlu1 %v572_v28  ;;  %v650_v11 = vld [vmem:[#allocation5 + $0x100] sm:$0xff]  ;;  %1068 = vmatpush.msra.mxu1 %v846_v51  ;;  %v667_v51 = vld [vmem:[#allocation5 + $0x188] sm:$0xff] }
 0x16e   :  { %v714_v3 = vld [vmem:[#allocation5 + $0x300] sm:$0xff]  ;;  %1009 = vmatpush.msrb.mxu2 %v650_v11 }
 0x16f   :  { %v778_v16 = vld [vmem:[#allocation5 + $0x500] sm:$0xff]  ;;  %1029 = vmatpush.msrb.mxu3 %v714_v3 }
 0x170   :  { %v842_v17 = vld [vmem:[#allocation5 + $0x700] sm:$0xff]  ;;  %1049 = vmatpush.msra.mxu0 %v778_v16  ;;  %v663_v16 = vld [vmem:[#allocation5 + $0x168] sm:$0xff] }
 0x171   :  { %v646_v14 = vld [vmem:[#allocation5 + $0xe0] sm:$0xff]  ;;  %1069 = vmatpush.msra.mxu1 %v842_v17  ;;  %v727_v17 = vld [vmem:[#allocation5 + $0x368] sm:$0xff] }
 0x172   :  { %v710_v18 = vld [vmem:[#allocation5 + $0x2e0] sm:$0xff]  ;;  %1010 = vmatpush.msrb.mxu2 %v646_v14 }
 0x173   :  { %v774_v19 = vld [vmem:[#allocation5 + $0x4e0] sm:$0xff]  ;;  %1030 = vmatpush.msrb.mxu3 %v710_v18  ;;  %v659_v18 = vld [vmem:[#allocation5 + $0x148] sm:$0xff] }
 0x174   :  { %v838_v20 = vld [vmem:[#allocation5 + $0x6e0] sm:$0xff]  ;;  %1050 = vmatpush.msra.mxu0 %v774_v19  ;;  %v723_v19 = vld [vmem:[#allocation5 + $0x348] sm:$0xff] }
 0x175   :  { %v642_v22 = vld [vmem:[#allocation5 + $0xc0] sm:$0xff]  ;;  %1070 = vmatpush.msra.mxu1 %v838_v20 }
 0x176   :  { %v706_v23 = vld [vmem:[#allocation5 + $0x2c0] sm:$0xff]  ;;  %1011 = vmatpush.msrb.mxu2 %v642_v22  ;;  %v655_v22 = vld [vmem:[#allocation5 + $0x128] sm:$0xff] }
 0x177   :  { %v770_v24 = vld [vmem:[#allocation5 + $0x4c0] sm:$0xff]  ;;  %1031 = vmatpush.msrb.mxu3 %v706_v23  ;;  %v719_v23 = vld [vmem:[#allocation5 + $0x328] sm:$0xff] }
 0x178   :  { %v834_v25 = vld [vmem:[#allocation5 + $0x6c0] sm:$0xff]  ;;  %1051 = vmatpush.msra.mxu0 %v770_v24 }
 0x179   :  { %v638_v27 = vld [vmem:[#allocation5 + $0xa0] sm:$0xff]  ;;  %1071 = vmatpush.msra.mxu1 %v834_v25 }
 0x17a   :  { %v702_v28 = vld [vmem:[#allocation5 + $0x2a0] sm:$0xff]  ;;  %1012 = vmatpush.msrb.mxu2 %v638_v27  ;;  %1052 = vmatpush.msra.mxu0 %v766_v29  ;;  %v715_v27 = vld [vmem:[#allocation5 + $0x308] sm:$0xff] }
 0x17b   :  { %1032 = vmatpush.msrb.mxu3 %v702_v28  ;;  %v762_v7 = vld [vmem:[#allocation5 + $0x480] sm:$0xff] }
 0x17c   :  { %v826_v37 = vld [vmem:[#allocation5 + $0x680] sm:$0xff]  ;;  %1053 = vmatpush.msra.mxu0 %v762_v7  ;;  %v707_v7 = vld [vmem:[#allocation5 + $0x2c8] sm:$0xff] }
 0x17d   :  { %v758_v41 = vld [vmem:[#allocation5 + $0x460] sm:$0xff] }
 0x17e   :  { %v822_v0 = vld [vmem:[#allocation5 + $0x660] sm:$0xff]  ;;  %1054 = vmatpush.msra.mxu0 %v758_v41  ;;  %v703_v41 = vld [vmem:[#allocation5 + $0x2a8] sm:$0xff] }
 0x17f   :  { %v626_v45 = vld [vmem:[#allocation5 + $0x40] sm:$0xff] }
 0x180   :  { %v754_v47 = vld [vmem:[#allocation5 + $0x440] sm:$0xff] }
 0x181   :  { %v818_v48 = vld [vmem:[#allocation5 + $0x640] sm:$0xff]  ;;  %1055 = vmatpush.msra.mxu0 %v754_v47  ;;  %v699_v47 = vld [vmem:[#allocation5 + $0x288] sm:$0xff] }
 0x182   :  { %v622_v49 = vld [vmem:[#allocation5 + $0x20] sm:$0xff] }
 0x183   :  { %v686_v50 = vld [vmem:[#allocation5 + $0x220] sm:$0xff] }
 0x184   :  { %v750_v52 = vld [vmem:[#allocation5 + $0x420] sm:$0xff] }
 0x185   :  { %v814_v54 = vld [vmem:[#allocation5 + $0x620] sm:$0xff]  ;;  %1056 = vmatpush.msra.mxu0 %v750_v52  ;;  %v695_v52 = vld [vmem:[#allocation5 + $0x268] sm:$0xff] }
 0x186   :  { %v618_v56 = vld [vmem:[#allocation5] sm:$0xff] }
 0x187   :  { %v682_v57 = vld [vmem:[#allocation5 + $0x200] sm:$0xff] }
 0x188   :  { %v746_v58 = vld [vmem:[#allocation5 + $0x400] sm:$0xff] }
 0x189   :  { %v810_v59 = vld [vmem:[#allocation5 + $0x600] sm:$0xff]  ;;  %1057 = vmatpush.msra.mxu0 %v746_v58  ;;  %v691_v58 = vld [vmem:[#allocation5 + $0x248] sm:$0xff] }
 0x18a   :  { %v934_v60 = vld [vmem:[#allocation5 + $0x9e0] sm:$0xff] }
 0x18b   :  { %v998_v61 = vld [vmem:[#allocation5 + $0xbe0] sm:$0xff]  ;;  %1122 = vmatpush.msrb.mxu0 %v679_v62  ;;  %v687_v62 = vld [vmem:[#allocation5 + $0x228] sm:$0xff] }
 0x18c   :  { %v930_v8 = vld [vmem:[#allocation5 + $0x9c0] sm:$0xff] }
 0x18d   :  { %1123 = vmatpush.msrb.mxu0 %v675_v10  ;;  %v922_v42 = vld [vmem:[#allocation5 + $0x980] sm:$0xff]  ;;  %v683_v10 = vld [vmem:[#allocation5 + $0x208] sm:$0xff] }
 0x18e   :  { %v986_v44 = vld [vmem:[#allocation5 + $0xb80] sm:$0xff] }
 0x18f   :  { %1124 = vmatpush.msrb.mxu0 %v671_v4  ;;  %v918_v11 = vld [vmem:[#allocation5 + $0x960] sm:$0xff] }
 0x190   :  { %v982_v3 = vld [vmem:[#allocation5 + $0xb60] sm:$0xff] }
 0x191   :  { %1125 = vmatpush.msrb.mxu0 %v667_v51  ;;  %v978_v14 = vld [vmem:[#allocation5 + $0xb40] sm:$0xff] }
 0x192   :  { %v910_v20 = vld [vmem:[#allocation5 + $0x920] sm:$0xff] }
 0x193   :  { %1126 = vmatpush.msrb.mxu0 %v663_v16  ;;  %v906_v24 = vld [vmem:[#allocation5 + $0x900] sm:$0xff] }
 0x194   :  { %v970_v25 = vld [vmem:[#allocation5 + $0xb00] sm:$0xff] }
 0x195   :  { %1127 = vmatpush.msrb.mxu0 %v659_v18  ;;  %v902_v28 = vld [vmem:[#allocation5 + $0x8e0] sm:$0xff]  ;;  %v867_v18 = vld [vmem:[#allocation5 + $0x7c8] sm:$0xff] }
 0x196   :  { %v966_v29 = vld [vmem:[#allocation5 + $0xae0] sm:$0xff] }
 0x197   :  { %1128 = vmatpush.msrb.mxu0 %v655_v22  ;;  %v863_v22 = vld [vmem:[#allocation5 + $0x7a8] sm:$0xff] }
 0x1de   :  { %v555_v31 = vpop.xlane.xlu0 %554 }
 0x1df   :  { %v2370_v15 = vmul.f32 0.001953125, %v555_v31  ;;  %v830_v31 = vld [vmem:[#allocation5 + $0x6a0] sm:$0xff] }
 0x1e0   :  { %v574_v32 = vpop.xlane.xlu1 %573  ;;  %1072 = vmatpush.msra.mxu1 %v830_v31  ;;  %v647_v31 = vld [vmem:[#allocation5 + $0xe8] sm:$0xff] }
 0x1e1   :  { %v576_v34 = vmul.f32 0.001953125, %v574_v32  ;;  %v577_v35 = vmul.f32 %v2370_v15, %v2370_v15  ;;  %v581_v4 = vsub.f32 %v2342_v40, %v2370_v15  ;;  %v935_v40 = vld [vmem:[#allocation5 + $0x9e8] sm:$0xff] }
 0x1e2   :  { %1073 = vmatpush.msra.mxu1 %v826_v37  ;;  %v894_v37 = vld [vmem:[#allocation5 + $0x8a0] sm:$0xff] }
 0x1e3   :  { %v578_v6 = vsub.f32 %v576_v34, %v577_v35  ;;  %v634_v34 = vld [vmem:[#allocation5 + $0x80] sm:$0xff] }
 0x1e4   :  { %1013 = vmatpush.msrb.mxu2 %v634_v34  ;;  %1074 = vmatpush.msra.mxu1 %v822_v0  ;;  %v898_v34 = vld [vmem:[#allocation5 + $0x8c0] sm:$0xff] }
 0x1e5   :  { %v2374_v33 = vadd.f32 1e-05, %v578_v6  ;;  %v698_v6 = vld [vmem:[#allocation5 + $0x280] sm:$0xff] }
 0x1e6   :  { %1033 = vmatpush.msrb.mxu3 %v698_v6  ;;  %1014 = vmatpush.msrb.mxu2 %v630_v38  ;;  %v643_v6 = vld [vmem:[#allocation5 + $0xc8] sm:$0xff]  ;;  %v958_v38 = vld [vmem:[#allocation5 + $0xaa0] sm:$0xff] }
 0x1e7   :  { %1911 = vrsqrt.f32 %v2374_v33  ;;  %vm592_vm1 = vweird.f32 %v2374_v33  ;;  %1075 = vmatpush.msra.mxu1 %v818_v48  ;;  %v890_v0 = vld [vmem:[#allocation5 + $0x880] sm:$0xff] }
 0x1e8   :  { %1015 = vmatpush.msrb.mxu2 %v626_v45  ;;  %v954_v45 = vld [vmem:[#allocation5 + $0xa80] sm:$0xff] }
 0x1e9   :  { %1076 = vmatpush.msra.mxu1 %v814_v54  ;;  %v886_v48 = vld [vmem:[#allocation5 + $0x860] sm:$0xff] }
 0x1ea   :  { %1016 = vmatpush.msrb.mxu2 %v622_v49  ;;  %v950_v49 = vld [vmem:[#allocation5 + $0xa60] sm:$0xff] }
 0x1eb   :  { %1077 = vmatpush.msra.mxu1 %v810_v59  ;;  %v882_v54 = vld [vmem:[#allocation5 + $0x840] sm:$0xff] }
 0x1ec   :  { %1017 = vmatpush.msrb.mxu2 %v618_v56  ;;  %v946_v56 = vld [vmem:[#allocation5 + $0xa40] sm:$0xff] }
 0x1ed   :  { %v1912_v9 = vpop.eup %1911  ;;  %1142 = vmatpush.msrb.mxu1 %v743_v5  ;;  %v878_v59 = vld [vmem:[#allocation5 + $0x820] sm:$0xff] }
 0x1ee   :  { %v587_v2 = vmul.f32 %v1912_v9, %v2374_v33  ;;  %vm593_vm0 = vweird.f32 %v1912_v9  ;;  %v694_v33 = vld [vmem:[#allocation5 + $0x260] sm:$0xff]  ;;  %1082 = vmatpush.msra.mxu2 %v934_v60 }
 0x1ef   :  { %vm594_vm2 = vmor %vm592_vm1, %vm593_vm0  ;;  %1034 = vmatpush.msrb.mxu3 %v694_v33  ;;  %1143 = vmatpush.msrb.mxu1 %v739_v1  ;;  %v639_v33 = vld [vmem:[#allocation5 + $0xa8] sm:$0xff]  ;;  %v942_v60 = vld [vmem:[#allocation5 + $0xa20] sm:$0xff] }
 0x1f0   :  { %v588_v53 = vmul.f32 %v1912_v9, %v587_v2  ;;  %1083 = vmatpush.msra.mxu2 %v930_v8  ;;  %v990_v2 = vld [vmem:[#allocation5 + $0xba0] sm:$0xff] }
 0x1f1   :  { %1035 = vmatpush.msrb.mxu3 %v690_v46  ;;  %v635_v46 = vld [vmem:[#allocation5 + $0x88] sm:$0xff]  ;;  %v874_v5 = vld [vmem:[#allocation5 + $0x800] sm:$0xff] }
 0x1f2   :  { %v589_v13 = vmul.f32 0.5, %v588_v53  ;;  %v731_v53 = vld [vmem:[#allocation5 + $0x388] sm:$0xff]  ;;  %v938_v8 = vld [vmem:[#allocation5 + $0xa00] sm:$0xff] }
 0x1f3   :  { %1036 = vmatpush.msrb.mxu3 %v686_v50  ;;  %v631_v50 = vld [vmem:[#allocation5 + $0x68] sm:$0xff] }
 0x1f4   :  { %v590_v21 = vsub.f32 1.5, %v589_v13  ;;  %v914_v13 = vld [vmem:[#allocation5 + $0x940] sm:$0xff] }
 0x1f5   :  { %1037 = vmatpush.msrb.mxu3 %v682_v57  ;;  %v627_v57 = vld [vmem:[#allocation5 + $0x48] sm:$0xff] }
 0x1f6   :  { %v591_v26 = vmul.f32 %v1912_v9, %v590_v21  ;;  %v974_v21 = vld [vmem:[#allocation5 + $0xb20] sm:$0xff] }
 0x1f7   :  { %1102 = vmatpush.msra.mxu3 %v998_v61  ;;  %v623_v61 = vld [vmem:[#allocation5 + $0x28] sm:$0xff] }
 0x1f8   :  { %v595_v32 = vsel %vm594_vm2, %v1912_v9, %v591_v26  ;;  %v994_v9 = vld [vmem:[#allocation5 + $0xbc0] sm:$0xff]  ;;  %v651_v26 = vld [vmem:[#allocation5 + $0x108] sm:$0xff] }
 0x1f9   :  { %v596_v35 = vmul.f32 %v595_v32, %v2251_v39  ;;  %1103 = vmatpush.msra.mxu3 %v994_v9  ;;  %1129 = vmatpush.msrb.mxu0 %v651_v26  ;;  %v711_v32 = vld [vmem:[#allocation5 + $0x2e8] sm:$0xff]  ;;  %v584_v26 = vsub.f32 %v2360_v12, %v2370_v15 }
 0x1fa   :  { %v619_v9 = vld [vmem:[#allocation5 + $0x8] sm:$0xff] }
 0x1fb   :  { %599 = vperm.xlu2 %1908, %v596_v35   ;;  %1104 = vmatpush.msra.mxu3 %v990_v2  ;;  %v962_v35 = vld [vmem:[#allocation5 + $0xac0] sm:$0xff]  ;;  %v580_v2 = vsub.f32 %v2344_v43, %v2370_v15  ;;  %v807_v43 = vld [vmem:[#allocation5 + $0x5e8] sm:$0xff] }
 0x1fc   :  { %1130 = vmatpush.msrb.mxu0 %v647_v31  ;;  %v987_v31 = vld [vmem:[#allocation5 + $0xb88] sm:$0xff] }
 0x1fd   :  { %1105 = vmatpush.msra.mxu3 %v986_v44  ;;  %v791_v12 = vld [vmem:[#allocation5 + $0x568] sm:$0xff] }
 0x1fe   :  { %1131 = vmatpush.msrb.mxu0 %v643_v6  ;;  %v919_v6 = vld [vmem:[#allocation5 + $0x968] sm:$0xff] }
 0x1ff   :  { %1106 = vmatpush.msra.mxu3 %v982_v3 }
 0x200   :  { %1132 = vmatpush.msrb.mxu0 %v639_v33  ;;  %v915_v33 = vld [vmem:[#allocation5 + $0x948] sm:$0xff] }
 0x201   :  { %1107 = vmatpush.msra.mxu3 %v978_v14  ;;  %v803_v14 = vld [vmem:[#allocation5 + $0x5c8] sm:$0xff] }
 0x202   :  { %1133 = vmatpush.msrb.mxu0 %v635_v46  ;;  %v911_v46 = vld [vmem:[#allocation5 + $0x928] sm:$0xff] }
 0x203   :  { %1909 = vset.pattern.permute.xlu2 %v2033_v30  ;;  %v926_v30 = vld [vmem:[#allocation5 + $0x9a0] sm:$0xff]  ;;  %1108 = vmatpush.msra.mxu3 %v974_v21  ;;  %v799_v21 = vld [vmem:[#allocation5 + $0x5a8] sm:$0xff] }
 0x204   :  { %609 = vperm.xlu2 %1909, %v2251_v39   ;;  %v735_v39 = vld [vmem:[#allocation5 + $0x3a8] sm:$0xff]  ;;  %1084 = vmatpush.msra.mxu2 %v926_v30  ;;  %v579_v30 = vsub.f32 %v2339_v36, %v2370_v15 }
 0x205   :  { %1144 = vmatpush.msrb.mxu1 %v735_v39  ;;  %1109 = vmatpush.msra.mxu3 %v970_v25  ;;  %v582_v39 = vsub.f32 %v2350_v55, %v2370_v15  ;;  %v999_v55 = vld [vmem:[#allocation5 + $0xbe8] sm:$0xff]  ;;  %v583_v25 = vsub.f32 %v2358_v63, %v2370_v15 }
 0x206   :  { %1085 = vmatpush.msra.mxu2 %v922_v42  ;;  %1134 = vmatpush.msrb.mxu0 %v631_v50  ;;  %v855_v15 = vld [vmem:[#allocation5 + $0x768] sm:$0xff] }
 0x207   :  { %1145 = vmatpush.msrb.mxu1 %v731_v53  ;;  %1110 = vmatpush.msra.mxu3 %v966_v29  ;;  %v923_v29 = vld [vmem:[#allocation5 + $0x988] sm:$0xff] }
 0x208   :  { %1086 = vmatpush.msra.mxu2 %v918_v11  ;;  %1135 = vmatpush.msrb.mxu0 %v627_v57  ;;  %v907_v50 = vld [vmem:[#allocation5 + $0x908] sm:$0xff] }
 0x209   :  { %1146 = vmatpush.msrb.mxu1 %v727_v17  ;;  %1111 = vmatpush.msra.mxu3 %v962_v35  ;;  %v903_v57 = vld [vmem:[#allocation5 + $0x8e8] sm:$0xff] }
 0x20a   :  { %1087 = vmatpush.msra.mxu2 %v914_v13  ;;  %1136 = vmatpush.msrb.mxu0 %v623_v61  ;;  %v871_v13 = vld [vmem:[#allocation5 + $0x7e8] sm:$0xff] }
 0x20b   :  { %1147 = vmatpush.msrb.mxu1 %v723_v19  ;;  %1112 = vmatpush.msra.mxu3 %v958_v38  ;;  %v931_v19 = vld [vmem:[#allocation5 + $0x9c8] sm:$0xff] }
 0x20c   :  { %1088 = vmatpush.msra.mxu2 %v910_v20  ;;  %1137 = vmatpush.msrb.mxu0 %v619_v9  ;;  %v995_v20 = vld [vmem:[#allocation5 + $0xbc8] sm:$0xff] }
 0x20d   :  { %1148 = vmatpush.msrb.mxu1 %v719_v23  ;;  %1113 = vmatpush.msra.mxu3 %v954_v45  ;;  %v927_v23 = vld [vmem:[#allocation5 + $0x9a8] sm:$0xff] }
 0x20e   :  { %1089 = vmatpush.msra.mxu2 %v906_v24  ;;  %v991_v24 = vld [vmem:[#allocation5 + $0xba8] sm:$0xff] }
 0x20f   :  { %1149 = vmatpush.msrb.mxu1 %v715_v27  ;;  %1114 = vmatpush.msra.mxu3 %v950_v49  ;;  %v795_v27 = vld [vmem:[#allocation5 + $0x588] sm:$0xff] }
 0x210   :  { %1090 = vmatpush.msra.mxu2 %v902_v28  ;;  %v859_v28 = vld [vmem:[#allocation5 + $0x788] sm:$0xff] }
 0x211   :  { %1150 = vmatpush.msrb.mxu1 %v711_v32  ;;  %1115 = vmatpush.msra.mxu3 %v946_v56  ;;  %v851_v38 = vld [vmem:[#allocation5 + $0x748] sm:$0xff] }
 0x212   :  { %1091 = vmatpush.msra.mxu2 %v898_v34  ;;  %v847_v45 = vld [vmem:[#allocation5 + $0x728] sm:$0xff] }
 0x213   :  { %1151 = vmatpush.msrb.mxu1 %v707_v7  ;;  %1116 = vmatpush.msra.mxu3 %v942_v60  ;;  %v983_v7 = vld [vmem:[#allocation5 + $0xb68] sm:$0xff] }
 0x214   :  { %1092 = vmatpush.msra.mxu2 %v894_v37  ;;  %v787_v37 = vld [vmem:[#allocation5 + $0x548] sm:$0xff] }
 0x215   :  { %1152 = vmatpush.msrb.mxu1 %v703_v41  ;;  %1117 = vmatpush.msra.mxu3 %v938_v8  ;;  %v979_v41 = vld [vmem:[#allocation5 + $0xb48] sm:$0xff] }
 0x216   :  { %1093 = vmatpush.msra.mxu2 %v890_v0  ;;  %v783_v0 = vld [vmem:[#allocation5 + $0x528] sm:$0xff] }
 0x217   :  { %1153 = vmatpush.msrb.mxu1 %v699_v47  ;;  %v975_v47 = vld [vmem:[#allocation5 + $0xb28] sm:$0xff] }
 0x218   :  { %1094 = vmatpush.msra.mxu2 %v886_v48  ;;  %v779_v48 = vld [vmem:[#allocation5 + $0x508] sm:$0xff] }
 0x219   :  { %1154 = vmatpush.msrb.mxu1 %v695_v52  ;;  %v843_v49 = vld [vmem:[#allocation5 + $0x708] sm:$0xff] }
 0x21a   :  { %1095 = vmatpush.msra.mxu2 %v882_v54  ;;  %v971_v52 = vld [vmem:[#allocation5 + $0xb08] sm:$0xff] }
 0x21b   :  { %1155 = vmatpush.msrb.mxu1 %v691_v58  ;;  %v775_v54 = vld [vmem:[#allocation5 + $0x4e8] sm:$0xff] }
 0x21c   :  { %1096 = vmatpush.msra.mxu2 %v878_v59  ;;  %v839_v56 = vld [vmem:[#allocation5 + $0x6e8] sm:$0xff] }
 0x21d   :  { %1156 = vmatpush.msrb.mxu1 %v687_v62  ;;  %v967_v58 = vld [vmem:[#allocation5 + $0xae8] sm:$0xff] }
 0x21e   :  { %1097 = vmatpush.msra.mxu2 %v874_v5  ;;  %v771_v59 = vld [vmem:[#allocation5 + $0x4c8] sm:$0xff] }
 0x21f   :  { %1157 = vmatpush.msrb.mxu1 %v683_v10  ;;  %v835_v60 = vld [vmem:[#allocation5 + $0x6c8] sm:$0xff] }
 0x220   :  { %v899_v61 = vld [vmem:[#allocation5 + $0x8c8] sm:$0xff] }
 0x221   :  { %v963_v62 = vld [vmem:[#allocation5 + $0xac8] sm:$0xff] }
 0x222   :  { %v767_v5 = vld [vmem:[#allocation5 + $0x4a8] sm:$0xff] }
 0x223   :  { %v831_v8 = vld [vmem:[#allocation5 + $0x6a8] sm:$0xff] }
 0x224   :  { %v895_v9 = vld [vmem:[#allocation5 + $0x8a8] sm:$0xff] }
 0x225   :  { %v959_v10 = vld [vmem:[#allocation5 + $0xaa8] sm:$0xff] }
 0x255   :  { %v600_v1 = vpop.permute.xlu2 %599 }
 0x256   :  { %v602_v42 = vmul.f32 %v600_v1, %v579_v30  ;;  %v603_v44 = vmul.f32 %v600_v1, %v580_v2  ;;  %v604_v51 = vmul.f32 %v600_v1, %v581_v4  ;;  %v605_v53 = vmul.f32 %v600_v1, %v582_v39  ;;  %v827_v30 = vld [vmem:[#allocation5 + $0x688] sm:$0xff] }
 0x257   :  { %v606_v32 = vmul.f32 %v600_v1, %v583_v25  ;;  %v607_v34 = vmul.f32 %v600_v1, %v584_v26  ;;  %v763_v1 = vld [vmem:[#allocation5 + $0x488] sm:$0xff]  ;;  %v808_v25 = vld [vmem:[#allocation5 + $0x5f0] sm:$0xff] }
 0x258   :  { %v891_v2 = vld [vmem:[#allocation5 + $0x888] sm:$0xff]  ;;  %v872_v26 = vld [vmem:[#allocation5 + $0x7f0] sm:$0xff] }
 0x259   :  { %v955_v4 = vld [vmem:[#allocation5 + $0xa88] sm:$0xff] }
 0x25a   :  { %v759_v39 = vld [vmem:[#allocation5 + $0x468] sm:$0xff] }
 0x25e   :  { %v610_v11 = vpop.permute.xlu2 %609 }
 0x25f   :  { %v2391_v3 = vadd.f32 %v610_v11, %v602_v42  ;;  %v2393_v16 = vadd.f32 %v610_v11, %v603_v44  ;;  %v2395_v17 = vadd.f32 %v610_v11, %v604_v51  ;;  %v2397_v36 = vadd.f32 %v610_v11, %v605_v53  ;;  %v823_v42 = vld [vmem:[#allocation5 + $0x668] sm:$0xff] }
 0x260   :  { %v2407_v35 = vadd.f32 %v610_v11, %v606_v32  ;;  %v2409_v63 = vadd.f32 %v610_v11, %v607_v34  ;;  %v887_v44 = vld [vmem:[#allocation5 + $0x868] sm:$0xff]  ;;  %v672_v32 = vld [vmem:[#allocation5 + $0x1b0] sm:$0xff] }
 0x261   :  { %1018 = vmatmul.f32.vlgmr.msrb.gmra.mxu2 %v2391_v3  ;;  %1038 = vmatmul.f32.vlgmr.msrb.gmra.mxu3 %v2393_v16  ;;  %v951_v51 = vld [vmem:[#allocation5 + $0xa68] sm:$0xff]  ;;  %v736_v34 = vld [vmem:[#allocation5 + $0x3b0] sm:$0xff] }
 0x262   :  { %1058 = vmatmul.f32.vlgmr.msra.gmra.mxu0 %v2395_v17  ;;  %1078 = vmatmul.f32.vlgmr.msra.gmra.mxu1 %v2397_v36  ;;  %v755_v53 = vld [vmem:[#allocation5 + $0x448] sm:$0xff] }
 0x263   :  { %1162 = vmatpush.msrb.mxu2 %v807_v43  ;;  %1182 = vmatpush.msrb.mxu3 %v871_v13  ;;  %v819_v11 = vld [vmem:[#allocation5 + $0x648] sm:$0xff] }
 0x264   :  { %1202 = vmatpush.msra.mxu0 %v935_v40  ;;  %1222 = vmatpush.msra.mxu1 %v999_v55  ;;  %v883_v43 = vld [vmem:[#allocation5 + $0x848] sm:$0xff] }
 0x265   :  { %1163 = vmatpush.msrb.mxu2 %v803_v14  ;;  %1183 = vmatpush.msrb.mxu3 %v867_v18  ;;  %v947_v13 = vld [vmem:[#allocation5 + $0xa48] sm:$0xff] }
 0x266   :  { %1203 = vmatpush.msra.mxu0 %v931_v19  ;;  %1223 = vmatpush.msra.mxu1 %v995_v20  ;;  %v751_v40 = vld [vmem:[#allocation5 + $0x428] sm:$0xff] }
 0x267   :  { %1164 = vmatpush.msrb.mxu2 %v799_v21  ;;  %1184 = vmatpush.msrb.mxu3 %v863_v22  ;;  %v815_v55 = vld [vmem:[#allocation5 + $0x628] sm:$0xff] }
 0x268   :  { %1204 = vmatpush.msra.mxu0 %v927_v23  ;;  %1224 = vmatpush.msra.mxu1 %v991_v24  ;;  %v879_v14 = vld [vmem:[#allocation5 + $0x828] sm:$0xff]  ;;  %v680_v23 = vld [vmem:[#allocation5 + $0x1f0] sm:$0xff] }
 0x269   :  { %1165 = vmatpush.msrb.mxu2 %v795_v27  ;;  %1185 = vmatpush.msrb.mxu3 %v859_v28  ;;  %v943_v18 = vld [vmem:[#allocation5 + $0xa28] sm:$0xff]  ;;  %v744_v24 = vld [vmem:[#allocation5 + $0x3f0] sm:$0xff] }
 0x26a   :  { %1205 = vmatpush.msra.mxu0 %v923_v29  ;;  %1225 = vmatpush.msra.mxu1 %v987_v31  ;;  %v747_v19 = vld [vmem:[#allocation5 + $0x408] sm:$0xff]  ;;  %v676_v27 = vld [vmem:[#allocation5 + $0x1d0] sm:$0xff] }
 0x26b   :  { %1098 = vmatmul.f32.vlgmr.msra.gmra.mxu2 %v2407_v35  ;;  %1118 = vmatmul.f32.vlgmr.msra.gmra.mxu3 %v2409_v63  ;;  %v811_v20 = vld [vmem:[#allocation5 + $0x608] sm:$0xff]  ;;  %v740_v28 = vld [vmem:[#allocation5 + $0x3d0] sm:$0xff] }
 0x26c   :  { %1138 = vmatmul.f32.vlgmr.msrb.gmra.mxu0 %v2391_v3  ;;  %1158 = vmatmul.f32.vlgmr.msrb.gmra.mxu1 %v2393_v16  ;;  %v875_v21 = vld [vmem:[#allocation5 + $0x808] sm:$0xff]  ;;  %v804_v29 = vld [vmem:[#allocation5 + $0x5d0] sm:$0xff] }
 0x26d   :  { %1166 = vmatpush.msrb.mxu2 %v791_v12  ;;  %1186 = vmatpush.msrb.mxu3 %v855_v15  ;;  %v939_v22 = vld [vmem:[#allocation5 + $0xa08] sm:$0xff]  ;;  %v868_v31 = vld [vmem:[#allocation5 + $0x7d0] sm:$0xff] }
 0x26e   :  { %1206 = vmatpush.msra.mxu0 %v919_v6  ;;  %1226 = vmatpush.msra.mxu1 %v983_v7  ;;  %v800_v12 = vld [vmem:[#allocation5 + $0x5b0] sm:$0xff] }
 0x26f   :  { %1167 = vmatpush.msrb.mxu2 %v787_v37  ;;  %1187 = vmatpush.msrb.mxu3 %v851_v38  ;;  %v864_v15 = vld [vmem:[#allocation5 + $0x7b0] sm:$0xff] }
 0x270   :  { %1207 = vmatpush.msra.mxu0 %v915_v33  ;;  %1227 = vmatpush.msra.mxu1 %v979_v41  ;;  %v668_v6 = vld [vmem:[#allocation5 + $0x190] sm:$0xff] }
 0x271   :  { %1168 = vmatpush.msrb.mxu2 %v783_v0  ;;  %1188 = vmatpush.msrb.mxu3 %v847_v45  ;;  %v732_v7 = vld [vmem:[#allocation5 + $0x390] sm:$0xff] }
 0x272   :  { %1208 = vmatpush.msra.mxu0 %v911_v46  ;;  %1228 = vmatpush.msra.mxu1 %v975_v47  ;;  %v796_v37 = vld [vmem:[#allocation5 + $0x590] sm:$0xff] }
 0x273   :  { %1169 = vmatpush.msrb.mxu2 %v779_v48  ;;  %1189 = vmatpush.msrb.mxu3 %v843_v49  ;;  %v860_v38 = vld [vmem:[#allocation5 + $0x790] sm:$0xff] }
 0x274   :  { %1209 = vmatpush.msra.mxu0 %v907_v50  ;;  %1229 = vmatpush.msra.mxu1 %v971_v52  ;;  %v664_v33 = vld [vmem:[#allocation5 + $0x170] sm:$0xff] }
 0x275   :  { %1170 = vmatpush.msrb.mxu2 %v775_v54  ;;  %1190 = vmatpush.msrb.mxu3 %v839_v56  ;;  %v728_v41 = vld [vmem:[#allocation5 + $0x370] sm:$0xff] }
 0x276   :  { %1210 = vmatpush.msra.mxu0 %v903_v57  ;;  %1230 = vmatpush.msra.mxu1 %v967_v58  ;;  %v792_v0 = vld [vmem:[#allocation5 + $0x570] sm:$0xff] }
 0x277   :  { %1171 = vmatpush.msrb.mxu2 %v771_v59  ;;  %1191 = vmatpush.msrb.mxu3 %v835_v60  ;;  %v856_v45 = vld [vmem:[#allocation5 + $0x770] sm:$0xff] }
 0x278   :  { %1211 = vmatpush.msra.mxu0 %v899_v61  ;;  %1231 = vmatpush.msra.mxu1 %v963_v62  ;;  %v660_v46 = vld [vmem:[#allocation5 + $0x150] sm:$0xff] }
 0x279   :  { %1172 = vmatpush.msrb.mxu2 %v767_v5  ;;  %1192 = vmatpush.msrb.mxu3 %v831_v8  ;;  %v724_v47 = vld [vmem:[#allocation5 + $0x350] sm:$0xff] }
 0x27a   :  { %1212 = vmatpush.msra.mxu0 %v895_v9  ;;  %1232 = vmatpush.msra.mxu1 %v959_v10  ;;  %v788_v48 = vld [vmem:[#allocation5 + $0x550] sm:$0xff] }
 0x27b   :  { %1173 = vmatpush.msrb.mxu2 %v763_v1  ;;  %1193 = vmatpush.msrb.mxu3 %v827_v30  ;;  %v852_v49 = vld [vmem:[#allocation5 + $0x750] sm:$0xff] }
 0x27c   :  { %1213 = vmatpush.msra.mxu0 %v891_v2  ;;  %1233 = vmatpush.msra.mxu1 %v955_v4  ;;  %v656_v50 = vld [vmem:[#allocation5 + $0x130] sm:$0xff] }
 0x27d   :  { %1174 = vmatpush.msrb.mxu2 %v759_v39  ;;  %1194 = vmatpush.msrb.mxu3 %v823_v42  ;;  %v720_v52 = vld [vmem:[#allocation5 + $0x330] sm:$0xff] }
 0x27e   :  { %1214 = vmatpush.msra.mxu0 %v887_v44  ;;  %1234 = vmatpush.msra.mxu1 %v951_v51  ;;  %v784_v54 = vld [vmem:[#allocation5 + $0x530] sm:$0xff] }
 0x27f   :  { %1175 = vmatpush.msrb.mxu2 %v755_v53  ;;  %1195 = vmatpush.msrb.mxu3 %v819_v11  ;;  %v848_v56 = vld [vmem:[#allocation5 + $0x730] sm:$0xff] }
 0x280   :  { %1215 = vmatpush.msra.mxu0 %v883_v43  ;;  %1235 = vmatpush.msra.mxu1 %v947_v13  ;;  %v652_v57 = vld [vmem:[#allocation5 + $0x110] sm:$0xff] }
 0x281   :  { %1176 = vmatpush.msrb.mxu2 %v751_v40  ;;  %1196 = vmatpush.msrb.mxu3 %v815_v55  ;;  %v716_v58 = vld [vmem:[#allocation5 + $0x310] sm:$0xff] }
 0x282   :  { %1216 = vmatpush.msra.mxu0 %v879_v14  ;;  %1236 = vmatpush.msra.mxu1 %v943_v18  ;;  %v780_v59 = vld [vmem:[#allocation5 + $0x510] sm:$0xff] }
 0x283   :  { %1177 = vmatpush.msrb.mxu2 %v747_v19  ;;  %1197 = vmatpush.msrb.mxu3 %v811_v20  ;;  %v844_v60 = vld [vmem:[#allocation5 + $0x710] sm:$0xff] }
 0x284   :  { %1217 = vmatpush.msra.mxu0 %v875_v21  ;;  %1237 = vmatpush.msra.mxu1 %v939_v22  ;;  %v648_v61 = vld [vmem:[#allocation5 + $0xf0] sm:$0xff] }
 0x285   :  { %1178 = vmatmul.f32.vlgmr.msrb.gmra.mxu2 %v2395_v17  ;;  %1198 = vmatmul.f32.vlgmr.msrb.gmra.mxu3 %v2397_v36  ;;  %v712_v62 = vld [vmem:[#allocation5 + $0x2f0] sm:$0xff] }
 0x286   :  { %1218 = vmatmul.f32.vlgmr.msra.gmra.mxu0 %v2407_v35  ;;  %1238 = vmatmul.f32.vlgmr.msra.gmra.mxu1 %v2409_v63  ;;  %v776_v5 = vld [vmem:[#allocation5 + $0x4f0] sm:$0xff] }
 0x287   :  { %1242 = vmatpush.msra.mxu2 %v680_v23  ;;  %1262 = vmatpush.msra.mxu3 %v744_v24  ;;  %v840_v8 = vld [vmem:[#allocation5 + $0x6f0] sm:$0xff] }
 0x288   :  { %1282 = vmatpush.msrb.mxu0 %v808_v25  ;;  %1302 = vmatpush.msrb.mxu1 %v872_v26  ;;  %v644_v9 = vld [vmem:[#allocation5 + $0xd0] sm:$0xff] }
 0x289   :  { %1243 = vmatpush.msra.mxu2 %v676_v27  ;;  %1263 = vmatpush.msra.mxu3 %v740_v28  ;;  %v708_v10 = vld [vmem:[#allocation5 + $0x2d0] sm:$0xff] }
 0x28a   :  { %1283 = vmatpush.msrb.mxu0 %v804_v29  ;;  %1303 = vmatpush.msrb.mxu1 %v868_v31  ;;  %v772_v1 = vld [vmem:[#allocation5 + $0x4d0] sm:$0xff] }
 0x28b   :  { %1244 = vmatpush.msra.mxu2 %v672_v32  ;;  %1264 = vmatpush.msra.mxu3 %v736_v34  ;;  %v836_v30 = vld [vmem:[#allocation5 + $0x6d0] sm:$0xff]  ;;  %v681_v32 = vld [vmem:[#allocation5 + $0x1f8] sm:$0xff] }
 0x28c   :  { %1284 = vmatpush.msrb.mxu0 %v800_v12  ;;  %1304 = vmatpush.msrb.mxu1 %v864_v15  ;;  %v640_v2 = vld [vmem:[#allocation5 + $0xb0] sm:$0xff]  ;;  %v745_v34 = vld [vmem:[#allocation5 + $0x3f8] sm:$0xff] }
 0x28d   :  { %1245 = vmatpush.msra.mxu2 %v668_v6  ;;  %1265 = vmatpush.msra.mxu3 %v732_v7  ;;  %v704_v4 = vld [vmem:[#allocation5 + $0x2b0] sm:$0xff]  ;;  %v677_v6 = vld [vmem:[#allocation5 + $0x1d8] sm:$0xff] }
 0x28e   :  { %1285 = vmatpush.msrb.mxu0 %v796_v37  ;;  %1305 = vmatpush.msrb.mxu1 %v860_v38  ;;  %v768_v39 = vld [vmem:[#allocation5 + $0x4b0] sm:$0xff]  ;;  %v741_v7 = vld [vmem:[#allocation5 + $0x3d8] sm:$0xff] }
 0x28f   :  { %1246 = vmatpush.msra.mxu2 %v664_v33  ;;  %1266 = vmatpush.msra.mxu3 %v728_v41  ;;  %v832_v42 = vld [vmem:[#allocation5 + $0x6b0] sm:$0xff]  ;;  %v673_v33 = vld [vmem:[#allocation5 + $0x1b8] sm:$0xff] }
 0x290   :  { %1286 = vmatpush.msrb.mxu0 %v792_v0  ;;  %1306 = vmatpush.msrb.mxu1 %v856_v45  ;;  %v636_v44 = vld [vmem:[#allocation5 + $0x90] sm:$0xff]  ;;  %v737_v41 = vld [vmem:[#allocation5 + $0x3b8] sm:$0xff] }
 0x291   :  { %1247 = vmatpush.msra.mxu2 %v660_v46  ;;  %1267 = vmatpush.msra.mxu3 %v724_v47  ;;  %v700_v51 = vld [vmem:[#allocation5 + $0x290] sm:$0xff]  ;;  %v669_v46 = vld [vmem:[#allocation5 + $0x198] sm:$0xff] }
 0x292   :  { %1287 = vmatpush.msrb.mxu0 %v788_v48  ;;  %1307 = vmatpush.msrb.mxu1 %v852_v49  ;;  %v764_v53 = vld [vmem:[#allocation5 + $0x490] sm:$0xff]  ;;  %v733_v47 = vld [vmem:[#allocation5 + $0x398] sm:$0xff] }
 0x293   :  { %1248 = vmatpush.msra.mxu2 %v656_v50  ;;  %1268 = vmatpush.msra.mxu3 %v720_v52  ;;  %v828_v11 = vld [vmem:[#allocation5 + $0x690] sm:$0xff]  ;;  %v665_v50 = vld [vmem:[#allocation5 + $0x178] sm:$0xff] }
 0x294   :  { %1288 = vmatpush.msrb.mxu0 %v784_v54  ;;  %1308 = vmatpush.msrb.mxu1 %v848_v56  ;;  %v632_v43 = vld [vmem:[#allocation5 + $0x70] sm:$0xff]  ;;  %v729_v52 = vld [vmem:[#allocation5 + $0x378] sm:$0xff] }
 0x295   :  { %1249 = vmatpush.msra.mxu2 %v652_v57  ;;  %1269 = vmatpush.msra.mxu3 %v716_v58  ;;  %v696_v13 = vld [vmem:[#allocation5 + $0x270] sm:$0xff]  ;;  %v661_v57 = vld [vmem:[#allocation5 + $0x158] sm:$0xff] }
 0x296   :  { %1289 = vmatpush.msrb.mxu0 %v780_v59  ;;  %1309 = vmatpush.msrb.mxu1 %v844_v60  ;;  %v760_v40 = vld [vmem:[#allocation5 + $0x470] sm:$0xff]  ;;  %v725_v58 = vld [vmem:[#allocation5 + $0x358] sm:$0xff] }
 0x297   :  { %1250 = vmatpush.msra.mxu2 %v648_v61  ;;  %1270 = vmatpush.msra.mxu3 %v712_v62  ;;  %v824_v55 = vld [vmem:[#allocation5 + $0x670] sm:$0xff]  ;;  %v657_v61 = vld [vmem:[#allocation5 + $0x138] sm:$0xff] }
 0x298   :  { %1290 = vmatpush.msrb.mxu0 %v776_v5  ;;  %1310 = vmatpush.msrb.mxu1 %v840_v8  ;;  %v628_v14 = vld [vmem:[#allocation5 + $0x50] sm:$0xff]  ;;  %v721_v62 = vld [vmem:[#allocation5 + $0x338] sm:$0xff] }
 0x299   :  { %1251 = vmatpush.msra.mxu2 %v644_v9  ;;  %1271 = vmatpush.msra.mxu3 %v708_v10  ;;  %v692_v18 = vld [vmem:[#allocation5 + $0x250] sm:$0xff]  ;;  %v653_v9 = vld [vmem:[#allocation5 + $0x118] sm:$0xff] }
 0x29a   :  { %1291 = vmatpush.msrb.mxu0 %v772_v1  ;;  %1311 = vmatpush.msrb.mxu1 %v836_v30  ;;  %v756_v19 = vld [vmem:[#allocation5 + $0x450] sm:$0xff]  ;;  %v717_v10 = vld [vmem:[#allocation5 + $0x318] sm:$0xff] }
 0x29b   :  { %1252 = vmatpush.msra.mxu2 %v640_v2  ;;  %1272 = vmatpush.msra.mxu3 %v704_v4  ;;  %v820_v20 = vld [vmem:[#allocation5 + $0x650] sm:$0xff]  ;;  %v649_v2 = vld [vmem:[#allocation5 + $0xf8] sm:$0xff] }
 0x29c   :  { %1292 = vmatpush.msrb.mxu0 %v768_v39  ;;  %1312 = vmatpush.msrb.mxu1 %v832_v42  ;;  %v624_v21 = vld [vmem:[#allocation5 + $0x30] sm:$0xff]  ;;  %v713_v4 = vld [vmem:[#allocation5 + $0x2f8] sm:$0xff] }
 0x29d   :  { %1253 = vmatpush.msra.mxu2 %v636_v44  ;;  %1273 = vmatpush.msra.mxu3 %v700_v51  ;;  %v688_v22 = vld [vmem:[#allocation5 + $0x230] sm:$0xff]  ;;  %v645_v44 = vld [vmem:[#allocation5 + $0xd8] sm:$0xff] }
 0x29e   :  { %1293 = vmatpush.msrb.mxu0 %v764_v53  ;;  %1313 = vmatpush.msrb.mxu1 %v828_v11  ;;  %v752_v23 = vld [vmem:[#allocation5 + $0x430] sm:$0xff]  ;;  %v709_v51 = vld [vmem:[#allocation5 + $0x2d8] sm:$0xff] }
 0x29f   :  { %1254 = vmatpush.msra.mxu2 %v632_v43  ;;  %1274 = vmatpush.msra.mxu3 %v696_v13  ;;  %v816_v24 = vld [vmem:[#allocation5 + $0x630] sm:$0xff]  ;;  %v641_v43 = vld [vmem:[#allocation5 + $0xb8] sm:$0xff] }
 0x2a0   :  { %1294 = vmatpush.msrb.mxu0 %v760_v40  ;;  %1314 = vmatpush.msrb.mxu1 %v824_v55  ;;  %v620_v25 = vld [vmem:[#allocation5 + $0x10] sm:$0xff]  ;;  %v705_v13 = vld [vmem:[#allocation5 + $0x2b8] sm:$0xff] }
 0x2a1   :  { %1255 = vmatpush.msra.mxu2 %v628_v14  ;;  %1275 = vmatpush.msra.mxu3 %v692_v18  ;;  %v684_v26 = vld [vmem:[#allocation5 + $0x210] sm:$0xff]  ;;  %v637_v14 = vld [vmem:[#allocation5 + $0x98] sm:$0xff] }
 0x2a2   :  { %1295 = vmatpush.msrb.mxu0 %v756_v19  ;;  %1315 = vmatpush.msrb.mxu1 %v820_v20  ;;  %v748_v27 = vld [vmem:[#allocation5 + $0x410] sm:$0xff]  ;;  %v701_v18 = vld [vmem:[#allocation5 + $0x298] sm:$0xff] }
 0x2a3   :  { %1256 = vmatpush.msra.mxu2 %v624_v21  ;;  %1276 = vmatpush.msra.mxu3 %v688_v22  ;;  %v812_v28 = vld [vmem:[#allocation5 + $0x610] sm:$0xff]  ;;  %v633_v21 = vld [vmem:[#allocation5 + $0x78] sm:$0xff] }
 0x2a4   :  { %1296 = vmatpush.msrb.mxu0 %v752_v23  ;;  %1316 = vmatpush.msrb.mxu1 %v816_v24  ;;  %v936_v29 = vld [vmem:[#allocation5 + $0x9f0] sm:$0xff]  ;;  %v697_v22 = vld [vmem:[#allocation5 + $0x278] sm:$0xff] }
 0x2a5   :  { %1257 = vmatpush.msra.mxu2 %v620_v25  ;;  %1277 = vmatpush.msra.mxu3 %v684_v26  ;;  %v1000_v31 = vld [vmem:[#allocation5 + $0xbf0] sm:$0xff]  ;;  %v629_v25 = vld [vmem:[#allocation5 + $0x58] sm:$0xff] }
 0x2a6   :  { %1297 = vmatpush.msrb.mxu0 %v748_v27  ;;  %1317 = vmatpush.msrb.mxu1 %v812_v28  ;;  %v932_v12 = vld [vmem:[#allocation5 + $0x9d0] sm:$0xff]  ;;  %v693_v26 = vld [vmem:[#allocation5 + $0x258] sm:$0xff] }
 0x2a7   :  { %1258 = vmatmul.f32.vlgmr.msra.gmra.mxu2 %v2391_v3  ;;  %1278 = vmatmul.f32.vlgmr.msra.gmra.mxu3 %v2393_v16  ;;  %v996_v15 = vld [vmem:[#allocation5 + $0xbd0] sm:$0xff] }
 0x2a8   :  { %1298 = vmatmul.f32.vlgmr.msrb.gmra.mxu0 %v2395_v17  ;;  %1318 = vmatmul.f32.vlgmr.msrb.gmra.mxu1 %v2397_v36  ;;  %v928_v37 = vld [vmem:[#allocation5 + $0x9b0] sm:$0xff] }
 0x2a9   :  { %1322 = vmatpush.msrb.mxu2 %v936_v29  ;;  %1342 = vmatpush.msrb.mxu3 %v1000_v31  ;;  %v992_v38 = vld [vmem:[#allocation5 + $0xbb0] sm:$0xff]  ;;  %v625_v29 = vld [vmem:[#allocation5 + $0x38] sm:$0xff] }
 0x2aa   :  { %1362 = vmatpush.msra.mxu0 %v681_v32  ;;  %1382 = vmatpush.msra.mxu1 %v745_v34  ;;  %v924_v0 = vld [vmem:[#allocation5 + $0x990] sm:$0xff]  ;;  %v689_v31 = vld [vmem:[#allocation5 + $0x238] sm:$0xff] }
 0x2ab   :  { %1323 = vmatpush.msrb.mxu2 %v932_v12  ;;  %1343 = vmatpush.msrb.mxu3 %v996_v15  ;;  %v988_v45 = vld [vmem:[#allocation5 + $0xb90] sm:$0xff]  ;;  %v621_v12 = vld [vmem:[#allocation5 + $0x18] sm:$0xff] }
 0x2ac   :  { %1363 = vmatpush.msra.mxu0 %v677_v6  ;;  %1383 = vmatpush.msra.mxu1 %v741_v7  ;;  %v920_v48 = vld [vmem:[#allocation5 + $0x970] sm:$0xff]  ;;  %v685_v15 = vld [vmem:[#allocation5 + $0x218] sm:$0xff] }
 0x2ad   :  { %1324 = vmatpush.msrb.mxu2 %v928_v37  ;;  %1344 = vmatpush.msrb.mxu3 %v992_v38  ;;  %v984_v49 = vld [vmem:[#allocation5 + $0xb70] sm:$0xff]  ;;  %v809_v6 = vld [vmem:[#allocation5 + $0x5f8] sm:$0xff] }
 0x2ae   :  { %1364 = vmatpush.msra.mxu0 %v673_v33  ;;  %1384 = vmatpush.msra.mxu1 %v737_v41  ;;  %v916_v54 = vld [vmem:[#allocation5 + $0x950] sm:$0xff]  ;;  %v873_v7 = vld [vmem:[#allocation5 + $0x7f8] sm:$0xff] }
 0x2af   :  { %1325 = vmatpush.msrb.mxu2 %v924_v0  ;;  %1345 = vmatpush.msrb.mxu3 %v988_v45  ;;  %v980_v56 = vld [vmem:[#allocation5 + $0xb50] sm:$0xff]  ;;  %v937_v37 = vld [vmem:[#allocation5 + $0x9f8] sm:$0xff] }
 0x2b0   :  { %1365 = vmatpush.msra.mxu0 %v669_v46  ;;  %1385 = vmatpush.msra.mxu1 %v733_v47  ;;  %v912_v59 = vld [vmem:[#allocation5 + $0x930] sm:$0xff]  ;;  %v1001_v38 = vld [vmem:[#allocation5 + $0xbf8] sm:$0xff] }
 0x2b1   :  { %1326 = vmatpush.msrb.mxu2 %v920_v48  ;;  %1346 = vmatpush.msrb.mxu3 %v984_v49  ;;  %v976_v60 = vld [vmem:[#allocation5 + $0xb30] sm:$0xff]  ;;  %v805_v33 = vld [vmem:[#allocation5 + $0x5d8] sm:$0xff] }
 0x2b2   :  { %1366 = vmatpush.msra.mxu0 %v665_v50  ;;  %1386 = vmatpush.msra.mxu1 %v729_v52  ;;  %v908_v5 = vld [vmem:[#allocation5 + $0x910] sm:$0xff]  ;;  %v869_v41 = vld [vmem:[#allocation5 + $0x7d8] sm:$0xff] }
 0x2b3   :  { %1327 = vmatpush.msrb.mxu2 %v916_v54  ;;  %1347 = vmatpush.msrb.mxu3 %v980_v56  ;;  %v972_v8 = vld [vmem:[#allocation5 + $0xb10] sm:$0xff]  ;;  %v933_v45 = vld [vmem:[#allocation5 + $0x9d8] sm:$0xff] }
 0x2b4   :  { %1367 = vmatpush.msra.mxu0 %v661_v57  ;;  %1387 = vmatpush.msra.mxu1 %v725_v58  ;;  %v904_v1 = vld [vmem:[#allocation5 + $0x8f0] sm:$0xff]  ;;  %v997_v46 = vld [vmem:[#allocation5 + $0xbd8] sm:$0xff] }
 0x2b5   :  { %1328 = vmatpush.msrb.mxu2 %v912_v59  ;;  %1348 = vmatpush.msrb.mxu3 %v976_v60  ;;  %v968_v30 = vld [vmem:[#allocation5 + $0xaf0] sm:$0xff]  ;;  %v801_v47 = vld [vmem:[#allocation5 + $0x5b8] sm:$0xff] }
 0x2b6   :  { %1368 = vmatpush.msra.mxu0 %v657_v61  ;;  %1388 = vmatpush.msra.mxu1 %v721_v62  ;;  %v900_v39 = vld [vmem:[#allocation5 + $0x8d0] sm:$0xff]  ;;  %v865_v48 = vld [vmem:[#allocation5 + $0x7b8] sm:$0xff] }
 0x2b7   :  { %1329 = vmatpush.msrb.mxu2 %v908_v5  ;;  %1349 = vmatpush.msrb.mxu3 %v972_v8  ;;  %v964_v42 = vld [vmem:[#allocation5 + $0xad0] sm:$0xff]  ;;  %v993_v49 = vld [vmem:[#allocation5 + $0xbb8] sm:$0xff] }
 0x2b8   :  { %1369 = vmatpush.msra.mxu0 %v653_v9  ;;  %1389 = vmatpush.msra.mxu1 %v717_v10  ;;  %v896_v53 = vld [vmem:[#allocation5 + $0x8b0] sm:$0xff]  ;;  %v861_v50 = vld [vmem:[#allocation5 + $0x798] sm:$0xff] }
 0x2b9   :  { %1330 = vmatpush.msrb.mxu2 %v904_v1  ;;  %1350 = vmatpush.msrb.mxu3 %v968_v30  ;;  %v960_v11 = vld [vmem:[#allocation5 + $0xab0] sm:$0xff]  ;;  %v925_v52 = vld [vmem:[#allocation5 + $0x998] sm:$0xff] }
 0x2ba   :  { %1370 = vmatpush.msra.mxu0 %v649_v2  ;;  %1390 = vmatpush.msra.mxu1 %v713_v4  ;;  %v892_v40 = vld [vmem:[#allocation5 + $0x890] sm:$0xff]  ;;  %v989_v54 = vld [vmem:[#allocation5 + $0xb98] sm:$0xff] }
 0x2bb   :  { %1331 = vmatpush.msrb.mxu2 %v900_v39  ;;  %1351 = vmatpush.msrb.mxu3 %v964_v42  ;;  %v956_v55 = vld [vmem:[#allocation5 + $0xa90] sm:$0xff]  ;;  %v793_v56 = vld [vmem:[#allocation5 + $0x578] sm:$0xff] }
 0x2bc   :  { %1371 = vmatpush.msra.mxu0 %v645_v44  ;;  %1391 = vmatpush.msra.mxu1 %v709_v51  ;;  %v888_v19 = vld [vmem:[#allocation5 + $0x870] sm:$0xff]  ;;  %v857_v57 = vld [vmem:[#allocation5 + $0x778] sm:$0xff] }
 0x2bd   :  { %1332 = vmatpush.msrb.mxu2 %v896_v53  ;;  %1352 = vmatpush.msrb.mxu3 %v960_v11  ;;  %v952_v20 = vld [vmem:[#allocation5 + $0xa70] sm:$0xff]  ;;  %v921_v58 = vld [vmem:[#allocation5 + $0x978] sm:$0xff] }
 0x2be   :  { %1372 = vmatpush.msra.mxu0 %v641_v43  ;;  %1392 = vmatpush.msra.mxu1 %v705_v13  ;;  %v884_v23 = vld [vmem:[#allocation5 + $0x850] sm:$0xff]  ;;  %v985_v59 = vld [vmem:[#allocation5 + $0xb78] sm:$0xff] }
 0x2bf   :  { %1333 = vmatpush.msrb.mxu2 %v892_v40  ;;  %1353 = vmatpush.msrb.mxu3 %v956_v55  ;;  %v948_v24 = vld [vmem:[#allocation5 + $0xa50] sm:$0xff]  ;;  %v789_v60 = vld [vmem:[#allocation5 + $0x558] sm:$0xff] }
 0x2c0   :  { %1373 = vmatpush.msra.mxu0 %v637_v14  ;;  %1393 = vmatpush.msra.mxu1 %v701_v18  ;;  %v880_v27 = vld [vmem:[#allocation5 + $0x830] sm:$0xff]  ;;  %v853_v61 = vld [vmem:[#allocation5 + $0x758] sm:$0xff] }
 0x2c1   :  { %1334 = vmatpush.msrb.mxu2 %v888_v19  ;;  %1354 = vmatpush.msrb.mxu3 %v952_v20  ;;  %v944_v28 = vld [vmem:[#allocation5 + $0xa30] sm:$0xff]  ;;  %v917_v62 = vld [vmem:[#allocation5 + $0x958] sm:$0xff] }
 0x2c2   :  { %1374 = vmatpush.msra.mxu0 %v633_v21  ;;  %1394 = vmatpush.msra.mxu1 %v697_v22  ;;  %v876_v32 = vld [vmem:[#allocation5 + $0x810] sm:$0xff]  ;;  %v981_v5 = vld [vmem:[#allocation5 + $0xb58] sm:$0xff] }
 0x2c3   :  { %1335 = vmatpush.msrb.mxu2 %v884_v23  ;;  %1355 = vmatpush.msrb.mxu3 %v948_v24  ;;  %v940_v34 = vld [vmem:[#allocation5 + $0xa10] sm:$0xff]  ;;  %v1484_v8 = vld [vmem:[%s2454_s5 + $0x8] sm:$0xff] }
 0x2c4   :  { %1375 = vmatpush.msra.mxu0 %v629_v25  ;;  %1395 = vmatpush.msra.mxu1 %v693_v26  ;;  %v1483_v0 = vld [vmem:[%s2454_s5] sm:$0xff]  ;;  %1489 = vst [vmem:[#allocation1 + $0x10] ss:$2 sm:$0xff] %v1484_v8 }
 0x2c5   :  { %1336 = vmatpush.msrb.mxu2 %v880_v27  ;;  %1356 = vmatpush.msrb.mxu3 %v944_v28  ;;  %1487 = vst [vmem:[#allocation1] ss:$2 sm:$0xff] %v1483_v0  ;;  %v785_v9 = vld [vmem:[#allocation5 + $0x538] sm:$0xff] }
 0x2c6   :  { %1376 = vmatpush.msra.mxu0 %v625_v29  ;;  %1396 = vmatpush.msra.mxu1 %v689_v31  ;;  %v849_v10 = vld [vmem:[#allocation5 + $0x738] sm:$0xff] }
 0x2c7   :  { %1337 = vmatpush.msrb.mxu2 %v876_v32  ;;  %1357 = vmatpush.msrb.mxu3 %v940_v34  ;;  %v913_v1 = vld [vmem:[#allocation5 + $0x938] sm:$0xff] }
 0x2c8   :  { %1377 = vmatpush.msra.mxu0 %v621_v12  ;;  %1397 = vmatpush.msra.mxu1 %v685_v15  ;;  %v977_v30 = vld [vmem:[#allocation5 + $0xb38] sm:$0xff] }
 0x2c9   :  { %1338 = vmatmul.f32.vlgmr.msrb.gmra.mxu2 %v2407_v35  ;;  %1358 = vmatmul.f32.vlgmr.msrb.gmra.mxu3 %v2409_v63  ;;  %v781_v2 = vld [vmem:[#allocation5 + $0x518] sm:$0xff] }
 0x2ca   :  { %1378 = vmatmul.f32.vlgmr.msra.gmra.mxu0 %v2391_v3  ;;  %1398 = vmatmul.f32.vlgmr.msra.gmra.mxu1 %v2393_v16  ;;  %v929_v3 = vld [vmem:[#allocation5 + $0x9b8] sm:$0xff] }
 0x2cb   :  { %1402 = vmatpush.msra.mxu2 %v809_v6  ;;  %1422 = vmatpush.msra.mxu3 %v873_v7  ;;  %v797_v16 = vld [vmem:[#allocation5 + $0x598] sm:$0xff] }
 0x2cc   :  { %1442 = vmatpush.msrb.mxu0 %v937_v37  ;;  %1462 = vmatpush.msrb.mxu1 %v1001_v38  ;;  %v845_v4 = vld [vmem:[#allocation5 + $0x718] sm:$0xff] }
 0x2cd   :  { %1403 = vmatpush.msra.mxu2 %v805_v33  ;;  %1423 = vmatpush.msra.mxu3 %v869_v41  ;;  %v909_v39 = vld [vmem:[#allocation5 + $0x918] sm:$0xff] }
 0x2ce   :  { %1443 = vmatpush.msrb.mxu0 %v933_v45  ;;  %1463 = vmatpush.msrb.mxu1 %v997_v46  ;;  %v973_v42 = vld [vmem:[#allocation5 + $0xb18] sm:$0xff] }
 0x2cf   :  { %1404 = vmatpush.msra.mxu2 %v801_v47  ;;  %1424 = vmatpush.msra.mxu3 %v865_v48  ;;  %v777_v44 = vld [vmem:[#allocation5 + $0x4f8] sm:$0xff] }
 0x2d0   :  { %1444 = vmatpush.msrb.mxu0 %v929_v3  ;;  %1464 = vmatpush.msrb.mxu1 %v993_v49  ;;  %v841_v51 = vld [vmem:[#allocation5 + $0x6f8] sm:$0xff] }
 0x2d1   :  { %1405 = vmatpush.msra.mxu2 %v797_v16  ;;  %1425 = vmatpush.msra.mxu3 %v861_v50  ;;  %v905_v53 = vld [vmem:[#allocation5 + $0x8f8] sm:$0xff]  ;;  %v1492_v16 = vld.sshfl [vmem:[#allocation1 + $0x10] sm:$0xff pattern:$0x75316420] }
 0x2d2   :  { %1445 = vmatpush.msrb.mxu0 %v925_v52  ;;  %1465 = vmatpush.msrb.mxu1 %v989_v54  ;;  %v969_v11 = vld [vmem:[#allocation5 + $0xaf8] sm:$0xff]  ;;  %v1493_v50 = vld.sshfl [vmem:[#allocation1 + $0x18] sm:$0xff pattern:$0x75316420] }
 0x2d3   :  { %1406 = vmatpush.msra.mxu2 %v793_v56  ;;  %1426 = vmatpush.msra.mxu3 %v857_v57  ;;  %v773_v43 = vld [vmem:[#allocation5 + $0x4d8] sm:$0xff]  ;;  %v1482_v57 = vld [vmem:[#allocation7] sm:$0xff] }
 0x2d4   :  { %1446 = vmatpush.msrb.mxu0 %v921_v58  ;;  %1466 = vmatpush.msrb.mxu1 %v985_v59  ;;  %v837_v13 = vld [vmem:[#allocation5 + $0x6d8] sm:$0xff] }
 0x2d5   :  { %1407 = vmatpush.msra.mxu2 %v789_v60  ;;  %1427 = vmatpush.msra.mxu3 %v853_v61  ;;  %v901_v40 = vld [vmem:[#allocation5 + $0x8d8] sm:$0xff] }
 0x2d6   :  { %1447 = vmatpush.msrb.mxu0 %v917_v62  ;;  %1467 = vmatpush.msrb.mxu1 %v981_v5  ;;  %v965_v55 = vld [vmem:[#allocation5 + $0xad8] sm:$0xff] }
 0x2d7   :  { %1408 = vmatpush.msra.mxu2 %v785_v9  ;;  %1428 = vmatpush.msra.mxu3 %v849_v10  ;;  %v769_v14 = vld [vmem:[#allocation5 + $0x4b8] sm:$0xff] }
 0x2d8   :  { %1448 = vmatpush.msrb.mxu0 %v913_v1  ;;  %1468 = vmatpush.msrb.mxu1 %v977_v30  ;;  %v833_v18 = vld [vmem:[#allocation5 + $0x6b8] sm:$0xff] }
 0x2d9   :  { %1409 = vmatpush.msra.mxu2 %v781_v2  ;;  %1429 = vmatpush.msra.mxu3 %v845_v4  ;;  %v897_v19 = vld [vmem:[#allocation5 + $0x8b8] sm:$0xff] }
 0x2da   :  { %1449 = vmatpush.msrb.mxu0 %v909_v39  ;;  %1469 = vmatpush.msrb.mxu1 %v973_v42  ;;  %v961_v20 = vld [vmem:[#allocation5 + $0xab8] sm:$0xff] }
 0x2db   :  { %1410 = vmatpush.msra.mxu2 %v777_v44  ;;  %1430 = vmatpush.msra.mxu3 %v841_v51  ;;  %v765_v21 = vld [vmem:[#allocation5 + $0x498] sm:$0xff]  ;;  %v1602_v44 = vld [vmem:[#allocation8 + $0x78] sm:$0xff] }
 0x2dc   :  { %1450 = vmatpush.msrb.mxu0 %v905_v53  ;;  %1470 = vmatpush.msrb.mxu1 %v969_v11  ;;  %v829_v22 = vld [vmem:[#allocation5 + $0x698] sm:$0xff]  ;;  %v1618_v51 = vld [vmem:[#allocation8 + $0xf8] sm:$0xff] }
 0x2dd   :  { %1411 = vmatpush.msra.mxu2 %v773_v43  ;;  %1431 = vmatpush.msra.mxu3 %v837_v13  ;;  %v893_v23 = vld [vmem:[#allocation5 + $0x898] sm:$0xff]  ;;  %v1600_v43 = vld [vmem:[#allocation8 + $0x68] sm:$0xff] }
 0x2de   :  { %1451 = vmatpush.msrb.mxu0 %v901_v40  ;;  %1471 = vmatpush.msrb.mxu1 %v965_v55  ;;  %v957_v24 = vld [vmem:[#allocation5 + $0xa98] sm:$0xff]  ;;  %v1616_v13 = vld [vmem:[#allocation8 + $0xe8] sm:$0xff]  ;;  %v1599_v40 = vld [vmem:[#allocation8 + $0x60] sm:$0xff] }
 0x2df   :  { %1412 = vmatpush.msra.mxu2 %v769_v14  ;;  %1432 = vmatpush.msra.mxu3 %v833_v18  ;;  %v761_v25 = vld [vmem:[#allocation5 + $0x478] sm:$0xff]  ;;  %v1059_v47 = vpop.f32.mrf.mxu0  ;;  %v1079_v52 = vpop.f32.mrf.mxu1  ;;  %v1634_v55 = vld [vmem:[#allocation8 + $0x178] sm:$0xff]  ;;  %v1615_v14 = vld [vmem:[#allocation8 + $0xe0] sm:$0xff] }
 0x2e0   :  { %1452 = vmatpush.msrb.mxu0 %v897_v19  ;;  %1472 = vmatpush.msrb.mxu1 %v961_v20  ;;  %v825_v26 = vld [vmem:[#allocation5 + $0x678] sm:$0xff]  ;;  %v1650_v19 = vld [vmem:[#allocation8 + $0x1f8] sm:$0xff]  ;;  %v1632_v20 = vld [vmem:[#allocation8 + $0x168] sm:$0xff] }
 0x2e1   :  { %1413 = vmatpush.msra.mxu2 %v765_v21  ;;  %1433 = vmatpush.msra.mxu3 %v829_v22  ;;  %v889_v27 = vld [vmem:[#allocation5 + $0x878] sm:$0xff]  ;;  %v1598_v21 = vld [vmem:[#allocation8 + $0x58] sm:$0xff] }
 0x2e2   :  { %v953_v28 = vld [vmem:[#allocation5 + $0xa78] sm:$0xff]  ;;  %1453 = vmatpush.msrb.mxu0 %v893_v23  ;;  %1473 = vmatpush.msrb.mxu1 %v957_v24  ;;  %v1614_v22 = vld [vmem:[#allocation8 + $0xd8] sm:$0xff]  ;;  %v1631_v24 = vld [vmem:[#allocation8 + $0x160] sm:$0xff] }
 0x2e3   :  { %v757_v29 = vld [vmem:[#allocation5 + $0x458] sm:$0xff]  ;;  %1414 = vmatpush.msra.mxu2 %v761_v25  ;;  %1434 = vmatpush.msra.mxu3 %v825_v26  ;;  %v1648_v25 = vld [vmem:[#allocation8 + $0x1e8] sm:$0xff] }
 0x2e4   :  { %v821_v31 = vld [vmem:[#allocation5 + $0x658] sm:$0xff]  ;;  %1454 = vmatpush.msrb.mxu0 %v889_v27  ;;  %1474 = vmatpush.msrb.mxu1 %v953_v28  ;;  %v1019_v6 = vpop.f32.mrf.mxu2  ;;  %v1039_v7 = vpop.f32.mrf.mxu3  ;;  %v1596_v28 = vld [vmem:[#allocation8 + $0x48] sm:$0xff] }
 0x2e5   :  { %v885_v32 = vld [vmem:[#allocation5 + $0x858] sm:$0xff]  ;;  %1415 = vmatpush.msra.mxu2 %v757_v29  ;;  %1435 = vmatpush.msra.mxu3 %v821_v31  ;;  %v1040_v33 = vadd.f32 %v1039_v7, %v1019_v6  ;;  %v1612_v29 = vld [vmem:[#allocation8 + $0xc8] sm:$0xff]  ;;  %v1595_v31 = vld [vmem:[#allocation8 + $0x40] sm:$0xff] }
 0x2e6   :  { %v949_v34 = vld [vmem:[#allocation5 + $0xa58] sm:$0xff]  ;;  %1455 = vmatpush.msrb.mxu0 %v885_v32  ;;  %v1611_v32 = vld [vmem:[#allocation8 + $0xc0] sm:$0xff]  ;;  %v1610_v6 = vld [vmem:[#allocation8 + $0xb8] sm:$0xff] }
 0x2e7   :  { %v753_v12 = vld [vmem:[#allocation5 + $0x438] sm:$0xff]  ;;  %1475 = vmatpush.msrb.mxu1 %v949_v34  ;;  %v1060_v48 = vadd.f32 %v1059_v47, %v1040_v33  ;;  %v1630_v7 = vld [vmem:[#allocation8 + $0x158] sm:$0xff] }
 0x2e8   :  { %v817_v15 = vld [vmem:[#allocation5 + $0x638] sm:$0xff]  ;;  %1416 = vmatpush.msra.mxu2 %v753_v12 }
 0x2e9   :  { %v881_v37 = vld [vmem:[#allocation5 + $0x838] sm:$0xff]  ;;  %1436 = vmatpush.msra.mxu3 %v817_v15  ;;  %v1080_v54 = vadd.f32 %v1079_v52, %v1060_v48  ;;  %v1594_v15 = vld [vmem:[#allocation8 + $0x38] sm:$0xff]  ;;  %v1608_v48 = vld [vmem:[#allocation8 + $0xa8] sm:$0xff] }
 0x2ea   :  { %v945_v38 = vld [vmem:[#allocation5 + $0xa38] sm:$0xff]  ;;  %1456 = vmatpush.msrb.mxu0 %v881_v37  ;;  %v1647_v37 = vld [vmem:[#allocation8 + $0x1e0] sm:$0xff] }
 0x2eb   :  { %v749_v41 = vld [vmem:[#allocation5 + $0x418] sm:$0xff]  ;;  %1476 = vmatpush.msrb.mxu1 %v945_v38 }
 0x2ec   :  { %v813_v0 = vld [vmem:[#allocation5 + $0x618] sm:$0xff]  ;;  %1417 = vmatpush.msra.mxu2 %v749_v41 }
 0x2ed   :  { %v877_v45 = vld [vmem:[#allocation5 + $0x818] sm:$0xff]  ;;  %1437 = vmatpush.msra.mxu3 %v813_v0  ;;  %1418 = vmatmul.f32.vlgmr.msra.gmra.mxu2 %v2395_v17 }
 0x2ee   :  { %v941_v46 = vld [vmem:[#allocation5 + $0xa18] sm:$0xff]  ;;  %1457 = vmatpush.msrb.mxu0 %v877_v45  ;;  %1438 = vmatmul.f32.vlgmr.msra.gmra.mxu3 %v2397_v36  ;;  %v1099_v56 = vpop.f32.mrf.mxu2  ;;  %v1119_v36 = vpop.f32.mrf.mxu3  ;;  %v1646_v45 = vld [vmem:[#allocation8 + $0x1d8] sm:$0xff] }
 0x2ef   :  { %1477 = vmatpush.msrb.mxu1 %v941_v46  ;;  %v1490_v3 = vld.sshfl [vmem:[#allocation1] sm:$0xff pattern:$0x75316420]  ;;  %v1491_v49 = vld.sshfl [vmem:[#allocation1 + $0x8] sm:$0xff pattern:$0x75316420]  ;;  %1458 = vmatmul.f32.vlgmr.msrb.gmra.mxu0 %v2407_v35  ;;  %v1100_v17 = vadd.f32 %v1099_v56, %v1080_v54  ;;  %v1139_v35 = vpop.f32.mrf.mxu0 }
 0x2f0   :  { %1478 = vmatmul.f32.vlgmr.msrb.gmra.mxu1 %v2409_v63  ;;  %1760 = vmatpush.msk.msrb.mxu2 %vm1498_vm3, %v1490_v3  ;;  %v1159_v63 = vpop.f32.mrf.mxu1  ;;  %v1601_v53 = vld [vmem:[#allocation8 + $0x70] sm:$0xff]  ;;  %v1592_v46 = vld [vmem:[#allocation8 + $0x28] sm:$0xff]  ;;  %v1591_v54 = vld [vmem:[#allocation8 + $0x20] sm:$0xff] }
 0x2f1   :  { %1762 = vmatpush.msk.msrb.mxu3 %vm1498_vm3, %v1491_v49  ;;  %v1120_v58 = vadd.f32 %v1119_v36, %v1100_v17  ;;  %v1160_v59 = vadd.f32 %v1159_v63, %v1139_v35  ;;  %v1617_v11 = vld [vmem:[#allocation8 + $0xf0] sm:$0xff]  ;;  %1691 = vmatpush.msra.mxu0 %v1634_v55  ;;  %v1628_v3 = vld [vmem:[#allocation8 + $0x148] sm:$0xff]  ;;  %v1607_v56 = vld [vmem:[#allocation8 + $0xa0] sm:$0xff] }
 0x2f2   :  { %1764 = vmatpush.msk.msra.mxu2 %vm1498_vm3, %v1492_v16  ;;  %v1633_v18 = vld [vmem:[#allocation8 + $0x170] sm:$0xff]  ;;  %1711 = vmatpush.msra.mxu1 %v1650_v19  ;;  %v1627_v17 = vld [vmem:[#allocation8 + $0x140] sm:$0xff]  ;;  %v1644_v36 = vld [vmem:[#allocation8 + $0x1c8] sm:$0xff] }
 0x2f3   :  { %1766 = vmatpush.msk.msra.mxu3 %vm1498_vm3, %v1493_v50  ;;  %1692 = vmatpush.msra.mxu0 %v1633_v18  ;;  %v1649_v23 = vld [vmem:[#allocation8 + $0x1f0] sm:$0xff]  ;;  %v1606_v35 = vld [vmem:[#allocation8 + $0x98] sm:$0xff]  ;;  %v1619_v55 = vld [vmem:[#allocation8 + $0x100] sm:$0xff] }
 0x2f4   :  { %v1597_v26 = vld [vmem:[#allocation8 + $0x50] sm:$0xff]  ;;  %1712 = vmatpush.msra.mxu1 %v1649_v23  ;;  %v1626_v63 = vld [vmem:[#allocation8 + $0x138] sm:$0xff]  ;;  %v1635_v18 = vld [vmem:[#allocation8 + $0x180] sm:$0xff] }
 0x2f5   :  { %1761 = vmatmul.msk.f32.vlgmr.msrb.gmra.mxu2 %vm1494_vm4, %v1482_v57  ;;  %v1613_v27 = vld [vmem:[#allocation8 + $0xd0] sm:$0xff]  ;;  %1693 = vmatpush.msra.mxu0 %v1632_v20 }
 0x2f6   :  { %1763 = vmatmul.msk.f32.vlgmr.msrb.gmra.mxu3 %vm1494_vm4, %v1482_v57  ;;  %1651 = vmatpush.msrb.mxu2 %v1602_v44  ;;  %v1593_v38 = vld [vmem:[#allocation8 + $0x30] sm:$0xff]  ;;  %v1623_v44 = vld [vmem:[#allocation8 + $0x120] sm:$0xff] }
 0x2f7   :  { %1671 = vmatpush.msrb.mxu3 %v1618_v51  ;;  %1694 = vmatpush.msra.mxu0 %v1631_v24  ;;  %v1609_v33 = vld [vmem:[#allocation8 + $0xb0] sm:$0xff]  ;;  %v1640_v51 = vld [vmem:[#allocation8 + $0x1a8] sm:$0xff] }
 0x2f8   :  { %1652 = vmatpush.msrb.mxu2 %v1601_v53  ;;  %1713 = vmatpush.msra.mxu1 %v1648_v25  ;;  %v1629_v0 = vld [vmem:[#allocation8 + $0x150] sm:$0xff]  ;;  %v1639_v53 = vld [vmem:[#allocation8 + $0x1a0] sm:$0xff] }
 0x2f9   :  { %1672 = vmatpush.msrb.mxu3 %v1617_v11  ;;  %1695 = vmatpush.msra.mxu0 %v1630_v7  ;;  %v1645_v49 = vld [vmem:[#allocation8 + $0x1d0] sm:$0xff] }
 0x2fa   :  { %1653 = vmatpush.msrb.mxu2 %v1600_v43  ;;  %1714 = vmatpush.msra.mxu1 %v1647_v37  ;;  %v1621_v11 = vld [vmem:[#allocation8 + $0x110] sm:$0xff]  ;;  %v1638_v43 = vld [vmem:[#allocation8 + $0x198] sm:$0xff] }
 0x2fb   :  { %1673 = vmatpush.msrb.mxu3 %v1616_v13  ;;  %1696 = vmatpush.msra.mxu0 %v1629_v0  ;;  %v1620_v13 = vld [vmem:[#allocation8 + $0x108] sm:$0xff] }
 0x2fc   :  { %1654 = vmatpush.msrb.mxu2 %v1599_v40  ;;  %1715 = vmatpush.msra.mxu1 %v1646_v45  ;;  %v1637_v40 = vld [vmem:[#allocation8 + $0x190] sm:$0xff] }
 0x2fd   :  { %1765 = vmatmul.msk.f32.vlgmr.msra.gmra.mxu2 %vm1494_vm4, %v1482_v57  ;;  %1674 = vmatpush.msrb.mxu3 %v1615_v14  ;;  %v1636_v14 = vld [vmem:[#allocation8 + $0x188] sm:$0xff] }
 0x2fe   :  { %1767 = vmatmul.msk.f32.vlgmr.msra.gmra.mxu3 %vm1494_vm4, %v1482_v57  ;;  %1655 = vmatpush.msrb.mxu2 %v1598_v21 }
 0x2ff   :  { %1675 = vmatpush.msrb.mxu3 %v1614_v22  ;;  %1697 = vmatpush.msra.mxu0 %v1628_v3 }
 0x300   :  { %1656 = vmatpush.msrb.mxu2 %v1597_v26  ;;  %1716 = vmatpush.msra.mxu1 %v1645_v49 }
 0x301   :  { %1676 = vmatpush.msrb.mxu3 %v1613_v27  ;;  %1698 = vmatpush.msra.mxu0 %v1627_v17 }
 0x302   :  { %1657 = vmatpush.msrb.mxu2 %v1596_v28  ;;  %1717 = vmatpush.msra.mxu1 %v1644_v36 }
 0x303   :  { %v1219_v8 = vpop.f32.mrf.mxu0  ;;  %v1239_v10 = vpop.f32.mrf.mxu1  ;;  %1677 = vmatpush.msrb.mxu3 %v1612_v29  ;;  %1699 = vmatpush.msra.mxu0 %v1626_v63 }
 0x304   :  { %1658 = vmatpush.msrb.mxu2 %v1595_v31 }
 0x305   :  { %1678 = vmatpush.msrb.mxu3 %v1611_v32 }
 0x306   :  { %1659 = vmatpush.msrb.mxu2 %v1594_v15 }
 0x307   :  { %1679 = vmatpush.msrb.mxu3 %v1610_v6 }
 0x308   :  { %v1179_v60 = vpop.f32.mrf.mxu2  ;;  %v1199_v62 = vpop.f32.mrf.mxu3  ;;  %1660 = vmatpush.msrb.mxu2 %v1593_v38 }
 0x309   :  { %v1180_v61 = vadd.f32 %v1179_v60, %v1160_v59  ;;  %1680 = vmatpush.msrb.mxu3 %v1609_v33  ;;  %v1643_v60 = vld [vmem:[#allocation8 + $0x1c0] sm:$0xff] }
 0x30a   :  { %1661 = vmatpush.msrb.mxu2 %v1592_v46  ;;  %1718 = vmatpush.msra.mxu1 %v1643_v60 }
 0x30b   :  { %v1200_v5 = vadd.f32 %v1199_v62, %v1180_v61  ;;  %1681 = vmatpush.msrb.mxu3 %v1608_v48  ;;  %v1589_v61 = vld [vmem:[#allocation8 + $0x10] sm:$0xff] }
 0x30c   :  { %1662 = vmatpush.msrb.mxu2 %v1591_v54  ;;  %v1605_v62 = vld [vmem:[#allocation8 + $0x90] sm:$0xff] }
 0x30d   :  { %v1220_v9 = vadd.f32 %v1219_v8, %v1200_v5  ;;  %1682 = vmatpush.msrb.mxu3 %v1607_v56  ;;  %v1625_v5 = vld [vmem:[#allocation8 + $0x130] sm:$0xff] }
 0x30e   :  { %1700 = vmatpush.msra.mxu0 %v1625_v5 }
 0x30f   :  { %v1240_v1 = vadd.f32 %v1239_v10, %v1220_v9  ;;  %1683 = vmatpush.msrb.mxu3 %v1606_v35  ;;  %v1642_v9 = vld [vmem:[#allocation8 + $0x1b8] sm:$0xff]  ;;  %v1588_v10 = vld [vmem:[#allocation8 + $0x8] sm:$0xff] }
 0x310   :  { %1719 = vmatpush.msra.mxu1 %v1642_v9 }
 0x311   :  { %v1732_v30 = vrot.slane %v1240_v1, 6  ;;  %1684 = vmatpush.msrb.mxu3 %v1605_v62  ;;  %v1604_v1 = vld [vmem:[#allocation8 + $0x88] sm:$0xff] }
 0x313   :  { %v2442_v2 = vsel %vm542_vm12, %v1120_v58, %v1732_v30  ;;  %v1590_v58 = vld [vmem:[#allocation8 + $0x18] sm:$0xff]  ;;  %v1624_v30 = vld [vmem:[#allocation8 + $0x128] sm:$0xff]  ;;  %1685 = vmatpush.msrb.mxu3 %v1604_v1 }
 0x314   :  { %1663 = vmatpush.msrb.mxu2 %v1590_v58  ;;  %1701 = vmatpush.msra.mxu0 %v1624_v30 }
 0x316   :  { %1664 = vmatpush.msrb.mxu2 %v1589_v61  ;;  %1702 = vmatpush.msra.mxu0 %v1623_v44 }
 0x318   :  { %1665 = vmatpush.msrb.mxu2 %v1588_v10 }
 0x325   :  { %v1299_v34 = vpop.f32.mrf.mxu0  ;;  %v1319_v41 = vpop.f32.mrf.mxu1 }
 0x32a   :  { %v1259_v4 = vpop.f32.mrf.mxu2  ;;  %v1279_v39 = vpop.f32.mrf.mxu3 }
 0x32b   :  { %v1280_v42 = vadd.f32 %v1279_v39, %v1259_v4  ;;  %v1641_v4 = vld [vmem:[#allocation8 + $0x1b0] sm:$0xff]  ;;  %v1587_v39 = vld [vmem:[#allocation8] sm:$0xff] }
 0x32c   :  { %1720 = vmatpush.msra.mxu1 %v1641_v4  ;;  %1666 = vmatpush.msrb.mxu2 %v1587_v39 }
 0x32d   :  { %v1300_v12 = vadd.f32 %v1299_v34, %v1280_v42  ;;  %v1603_v42 = vld [vmem:[#allocation8 + $0x80] sm:$0xff] }
 0x32e   :  { %1686 = vmatpush.msrb.mxu3 %v1603_v42  ;;  %1721 = vmatpush.msra.mxu1 %v1640_v51 }
 0x32f   :  { %v1320_v47 = vadd.f32 %v1319_v41, %v1300_v12 }
 0x330   :  { %1722 = vmatpush.msra.mxu1 %v1639_v53 }
 0x332   :  { %1723 = vmatpush.msra.mxu1 %v1638_v43 }
 0x334   :  { %1724 = vmatpush.msra.mxu1 %v1637_v40 }
 0x336   :  { %1725 = vmatpush.msra.mxu1 %v1636_v14 }
 0x338   :  { %1726 = vmatpush.msra.mxu1 %v1635_v18 }
 0x347   :  { %v1379_v19 = vpop.f32.mrf.mxu0  ;;  %v1399_v20 = vpop.f32.mrf.mxu1 }
 0x348   :  { %v1400_v21 = vadd.f32 %v1399_v20, %v1379_v19 }
 0x34c   :  { %v1339_v16 = vpop.f32.mrf.mxu2  ;;  %v1359_v52 = vpop.f32.mrf.mxu3 }
 0x34d   :  { %v1340_v50 = vadd.f32 %v1339_v16, %v1320_v47 }
 0x34f   :  { %v1360_v57 = vadd.f32 %v1359_v52, %v1340_v50 }
 0x351   :  { %v1735_v59 = vrot.slane %v1360_v57, 4 }
 0x353   :  { %v1741_v8 = vsel %vm1498_vm3, %v2442_v2, %v1735_v59  ;;  %v1622_v2 = vld [vmem:[#allocation8 + $0x118] sm:$0xff] }
 0x354   :  { %1703 = vmatpush.msra.mxu0 %v1622_v2 }
 0x356   :  { %1704 = vmatpush.msra.mxu0 %v1621_v11 }
 0x358   :  { %1705 = vmatpush.msra.mxu0 %v1620_v13 }
 0x35a   :  { %1706 = vmatpush.msra.mxu0 %v1619_v55 }
 0x36c   :  { %v1459_v26 = vpop.f32.mrf.mxu0 }
 0x36d   :  { %v1479_v28 = vpop.f32.mrf.mxu1 }
 0x370   :  { %v1419_v22 = vpop.f32.mrf.mxu2 }
 0x371   :  { %v1439_v23 = vpop.f32.mrf.mxu3  ;;  %v1420_v24 = vadd.f32 %v1419_v22, %v1400_v21 }
 0x373   :  { %v1440_v25 = vadd.f32 %v1439_v23, %v1420_v24 }
 0x375   :  { %v1460_v27 = vadd.f32 %v1459_v26, %v1440_v25 }
 0x377   :  { %v1480_v29 = vadd.f32 %v1479_v28, %v1460_v27 }
 0x378   :  { %v1524_v31 = vpop.f32.mrf.mxu2 }
 0x379   :  { %v1544_v32 = vpop.f32.mrf.mxu3  ;;  %v1738_v34 = vrot.slane %v1480_v29, 2  ;;  %1667 = vmatmul.f32.vlgmr.msrb.gmra.mxu2 %v1524_v31 }
 0x37a   :  { %1687 = vmatmul.f32.vlgmr.msrb.gmra.mxu3 %v1544_v32 }
 0x37b   :  { %v1743_v12 = vsel %vm1742_vm5, %v1741_v8, %v1738_v34 }
 0x380   :  { %v1564_v15 = vpop.f32.mrf.mxu2 }
 0x381   :  { %v1584_v6 = vpop.f32.mrf.mxu3  ;;  %1707 = vmatmul.f32.vlgmr.msra.gmra.mxu0 %v1564_v15 }
 0x382   :  { %1727 = vmatmul.f32.vlgmr.msra.gmra.mxu1 %v1584_v6 }
 0x3fc   :  { %v1668_v7 = vpop.f32.mrf.mxu2 }
 0x3fd   :  { %v1688_v37 = vpop.f32.mrf.mxu3 }
 0x3fe   :  { %v1689_v38 = vadd.f32 %v1688_v37, %v1668_v7  ;;  %v1708_v33 = vpop.f32.mrf.mxu0 }
 0x3ff   :  { %v1728_v41 = vpop.f32.mrf.mxu1 }
 0x400   :  { %v1709_v0 = vadd.f32 %v1708_v33, %v1689_v38 }
 0x402   :  { %v1729_v45 = vadd.f32 %v1728_v41, %v1709_v0 }
 0x404   :  { %v1744_v46 = vmul.f32 0.2, %v1729_v45 }
 0x406   :  { %v1745_v47 = vadd.f32 %v1744_v46, %v1743_v12 }
 0x408   :  { %1746 = vst [vmem:[%s2457_s8] sm:$0xff] %v1745_v47 }
 0x409   :  { %1751 = vsyncpa [#allocation4], 1 }
 0x40a   :  { %1752 = vsyncpa [#allocation6], 1 }
 0x40b   :  { %1753 = vsyncpa [#allocation9], 1 }

</bundles_post_ra>
